<compile_context>
chip_gen: v5e
topology: v5e:2x2
jax: 0.10.0
libtpu: 0.0.40
codegen_flags: <defaults>
</compile_context>

<pallas_src>
import jax
import jax.numpy as jnp
from jax.experimental import pallas as pl
from jax.experimental.pallas import tpu as pltpu


def _attention_kernel(dec_ref, ctx_ref, mask_ref, w1t_ref, w2t_ref, b_ref,
                      out_ref, attn_ref, attn2_ref):
    """One grid step == Bt batch elements.

    dec_ref  : (Bt, D, H)       f32  VMEM
    ctx_ref  : (Bt, S*E, H)     f32  VMEM  (flattened over (set, enc); cast to
                                            bf16 in VMEM for the MXU)
    mask_ref : (Bt, 1, S*E)     i32  nonzero == masked
    w1t_ref  : (H, H)           bf16 == linear_out.weight[:, :H].T  (acts on c_t_2)
    w2t_ref  : (H, H)           bf16 == linear_out.weight[:, H:].T  (acts on dec_hidden)
    b_ref    : (1, H)           f32  == linear_out.bias
    out_ref  : (Bt, D, H)       f32
    attn_ref : (Bt, D, S*E)     bf16 (lane-dense; wrapper reshape -> (B,D,S,E), free)
    attn2_ref: (Bt, D, S)       f32
    """
    Bt, D, H = dec_ref.shape
    S = attn2_ref.shape[2]
    SE = ctx_ref.shape[1]
    E = SE // S

    # Hoisted constants (don't rebuild broadcasts inside the loops).
    lane_s = jax.lax.broadcasted_iota(jnp.int32, (D, S), 1)
    zero_f = jnp.float32(0.0)
    neg_big = jnp.float32(-1e30)

    c2_rows = []   # per-batch (D, H) bf16 pieces of c_t_2
    dh_rows = []   # per-batch (D, H) bf16 pieces of dec_hidden

    for b in range(Bt):
        dh = dec_ref[b]                               # (D, H) f32
        dh_bf = dh.astype(jnp.bfloat16)
        # Cast context to bf16 inside VMEM (f32 was DMA'd once from HBM).
        ctx_b = ctx_ref[b].astype(jnp.bfloat16)       # (S*E, H) bf16

        # Fused first-level scores: one wide MXU matmul (D,H) x (S*E,H)^T
        # -> (D, S*E), then a single additive-mask add (broadcast over D).
        scores = jax.lax.dot_general(
            dh_bf, ctx_b, (((1,), (1,)), ((), ())),
            preferred_element_type=jnp.float32)        # (D, S*E) f32
        bias = jnp.where(mask_ref[b] != 0, neg_big, zero_f)   # (1, S*E)
        scores = scores + bias

        c_t_2 = jnp.zeros((D, H), jnp.float32)
        attn2_mat = jnp.zeros((D, S), jnp.float32)

        # set_size is small & static -> unrolled loop; per-iteration live
        # values are a handful of vregs.
        for s in range(S):
            sc = scores[:, s * E:(s + 1) * E]          # (D, E) static lane slice

            # softmax over enc_len (f32; reciprocal on the EUP slot)
            m = jnp.max(sc, axis=-1, keepdims=True)
            p = jnp.exp(sc - m)
            denom = jnp.sum(p, axis=-1, keepdims=True)
            attn_s = p * pl.reciprocal(denom, approx=True)     # (D, E) f32

            # full-depth, lane-aligned bf16 store of the first-level weights
            attn_ref[b, :, s * E:(s + 1) * E] = attn_s.astype(attn_ref.dtype)

            # context vector for this encoder set: (D, E) @ (E, H) -> (D, H)
            ctx_s = ctx_b[s * E:(s + 1) * E, :]        # (E, H) bf16
            c_t_s = jnp.dot(attn_s.astype(jnp.bfloat16), ctx_s,
                            preferred_element_type=jnp.float32)  # (D, H) f32

            # second-level (raw, un-normalized) attention score:
            #   attn2[d, s] = <dec_hidden[d], c_t[d, s]>
            attn2_s = jnp.sum(dh * c_t_s, axis=-1, keepdims=True)   # (D, 1)
            # accumulate into a (D, S) vreg tile; stored once after the loop
            attn2_mat = attn2_mat + jnp.where(lane_s == s, attn2_s, zero_f)

            # c_t_2 = attn2 @ c_t  (per decoder step)
            c_t_2 = c_t_2 + attn2_s * c_t_s

        attn2_ref[b] = attn2_mat                      # single coalesced store
        c2_rows.append(c_t_2.astype(jnp.bfloat16))
        dh_rows.append(dh_bf)

    # Fused output projection for the whole batch block:
    #   output = tanh(c_t_2 @ W[:, :H]^T + dec_hidden @ W[:, H:]^T + b)
    # with pre-transposed weights -> plain (Bt*D, H) x (H, H) contractions.
    if Bt > 1:
        c2_all = jnp.concatenate(c2_rows, axis=0)     # (Bt*D, H) bf16
        dh_all = jnp.concatenate(dh_rows, axis=0)     # (Bt*D, H) bf16
    else:
        c2_all = c2_rows[0]
        dh_all = dh_rows[0]

    y = (jnp.dot(c2_all, w1t_ref[...], preferred_element_type=jnp.float32)
         + jnp.dot(dh_all, w2t_ref[...], preferred_element_type=jnp.float32)
         + b_ref[...])
    y = jnp.tanh(y)
    for b in range(Bt):
        out_ref[b] = y[b * D:(b + 1) * D, :].astype(out_ref.dtype)


def _choose_batch_block(B, D, S, E, H):
    """How many batch elements to process per grid step (static heuristic)."""
    ctx_block_bytes = 2 * S * E * H * 4          # double-buffered f32 context
    cap = max(1, min(
        256 // max(D, 1),                        # fill MXU M rows (v6e/v7x: 256)
        (12 * 1024 * 1024) // max(ctx_block_bytes, 1),   # v7x VMEM budget
        B))
    if B >= 2:
        cap = min(cap, max(1, B // 2))           # keep >=2 parallel grid steps
    for bt in range(cap, 0, -1):                 # exact divisor keeps maps simple
        if B % bt == 0:
            return bt
    return 1


@jax.jit
def attention_forward(dec_hidden, context, mask, W, b):
    """Pallas wrapper. W: (H, 2H) = linear_out.weight, b: (H,) = linear_out.bias."""
    B, D, H = dec_hidden.shape
    _, S, E, _ = context.shape
    Bt = _choose_batch_block(B, D, S, E, H)
    grid = B // Bt

    dec = dec_hidden.astype(jnp.float32)
    # Free reshape (contiguous, no transpose, no dtype change): the kernel DMAs
    # the f32 context directly and casts to bf16 in VMEM.
    ctx_flat = context.astype(jnp.float32).reshape(B, S * E, H)
    mask_flat = jnp.asarray(mask, jnp.int32).reshape(B, 1, S * E)

    # Pre-transposed (in_dim, out_dim) halves of linear_out.weight: one-time
    # tiny wrapper transpose -> plain (M,K)x(K,N) contraction in the kernel.
    W1t = jnp.transpose(W[:, :H]).astype(jnp.bfloat16)   # (H, H)
    W2t = jnp.transpose(W[:, H:]).astype(jnp.bfloat16)   # (H, H)
    b2d = b.reshape(1, H).astype(jnp.float32)

    out_shapes = (
        jax.ShapeDtypeStruct((B, D, H), jnp.float32),
        # attn is written flattened over (S, E): full-tile stores in-kernel and
        # a metadata-only reshape to the (B, D, S, E) interface afterwards.
        jax.ShapeDtypeStruct((B, D, S * E), jnp.bfloat16),
        jax.ShapeDtypeStruct((B, D, S), jnp.float32),
    )

    grid_spec = pltpu.PrefetchScalarGridSpec(
        num_scalar_prefetch=0,
        grid=(grid,),
        in_specs=[
            pl.BlockSpec((Bt, D, H), lambda i: (i, 0, 0)),
            pl.BlockSpec((Bt, S * E, H), lambda i: (i, 0, 0)),
            pl.BlockSpec((Bt, 1, S * E), lambda i: (i, 0, 0)),
            pl.BlockSpec((H, H), lambda i: (0, 0)),    # weights stay VMEM-resident
            pl.BlockSpec((H, H), lambda i: (0, 0)),
            pl.BlockSpec((1, H), lambda i: (0, 0)),
        ],
        out_specs=[
            pl.BlockSpec((Bt, D, H), lambda i: (i, 0, 0)),
            pl.BlockSpec((Bt, D, S * E), lambda i: (i, 0, 0)),
            pl.BlockSpec((Bt, D, S), lambda i: (i, 0, 0)),
        ],
    )

    out, attn_flat, attn2 = pl.pallas_call(
        _attention_kernel,
        out_shape=out_shapes,
        grid_spec=grid_spec,
        compiler_params=pltpu.CompilerParams(
            dimension_semantics=("parallel",),
            vmem_limit_bytes=32 * 1024 * 1024),
    )(dec, ctx_flat, mask_flat, W1t, W2t, b2d)

    attn = attn_flat.reshape(B, D, S, E)   # metadata-only, no extra HBM pass
    return out, attn, attn2


def attention_reference(dec_hidden, context, mask, W, b):
    """Pure-JAX reference mirroring the PyTorch forward (attn_mode=False)."""
    scores = jnp.einsum('bdh,bseh->bdse', dec_hidden, context)
    scores = jnp.where(mask[:, None, :, :] != 0, -jnp.inf, scores)
    attn = jax.nn.softmax(scores, axis=-1)                          # (B,D,S,E)
    c_t = jnp.einsum('bdse,bseh->bdsh', attn, context)              # (B,D,S,H)
    attn2 = jnp.einsum('bdh,bdsh->bds', dec_hidden, c_t)            # (B,D,S)
    c_t_2 = jnp.einsum('bds,bdsh->bdh', attn2, c_t)                 # (B,D,H)
    combined = jnp.concatenate([c_t_2, dec_hidden], axis=-1)        # (B,D,2H)
    out = jnp.tanh(combined @ W.T + b)
    return out, attn, attn2


if __name__ == "__main__":
    B, DEC_LEN, SET_SIZE, ENC_LEN, HID = 2, 8, 8, 128, 128

    key = jax.random.PRNGKey(0)
    k1, k2, k3, k4, k5 = jax.random.split(key, 5)

    # Deterministic synthetic inputs / parameters (no checkpoint loading).
    dec_hidden = jax.random.normal(k1, (B, DEC_LEN, HID), jnp.float32) * 0.125
    context = jax.random.normal(k2, (B, SET_SIZE, ENC_LEN, HID), jnp.float32) * 0.125
    mask = (jax.random.uniform(k3, (B, SET_SIZE, ENC_LEN)) < 0.2).astype(jnp.int32)
    mask = mask.at[:, :, 0].set(0)  # never fully mask a softmax row

    # linear_out = nn.Linear(2*dim, dim): weight (H, 2H), bias (H,)
    W = jax.random.normal(k4, (HID, 2 * HID), jnp.float32) * (1.0 / jnp.sqrt(2.0 * HID))
    b = jax.random.normal(k5, (HID,), jnp.float32) * 0.01

    out, attn, attn2 = attention_forward(dec_hidden, context, mask, W, b)
    jax.block_until_ready((out, attn, attn2))

    out_r, attn_r, attn2_r = attention_reference(dec_hidden, context, mask, W, b)
    assert out.shape == (B, DEC_LEN, HID)
    assert attn.shape == (B, DEC_LEN, SET_SIZE, ENC_LEN)
    assert attn2.shape == (B, DEC_LEN, SET_SIZE)
    assert jnp.allclose(out, out_r, rtol=1e-2, atol=1e-2)
    assert jnp.allclose(attn.astype(jnp.float32), attn_r, rtol=1e-2, atol=1e-2)
    assert jnp.allclose(attn2, attn2_r, rtol=1e-2, atol=1e-2)

    print("KERNEL_OK")
</pallas_src>

<mosaic_0001>
module attributes {stable_mosaic.version = 11 : i64} {
  func.func @_attention_kernel(%arg0: i32, %arg1: memref<1x8x128xf32, #tpu.memory_space<vmem>>, %arg2: memref<1x1024x128xf32, #tpu.memory_space<vmem>>, %arg3: memref<1x1x1024xi32, #tpu.memory_space<vmem>>, %arg4: memref<128x128xbf16, #tpu.memory_space<vmem>>, %arg5: memref<128x128xbf16, #tpu.memory_space<vmem>>, %arg6: memref<1x128xf32, #tpu.memory_space<vmem>>, %arg7: memref<1x8x128xf32, #tpu.memory_space<vmem>>, %arg8: memref<1x8x1024xbf16, #tpu.memory_space<vmem>>, %arg9: memref<1x8x8xf32, #tpu.memory_space<vmem>>) attributes {dimension_semantics = [#tpu.dimension_semantics<parallel>], iteration_bounds = array<i64: 2>, scalar_prefetch = 0 : i64, scratch_operands = 0 : i64, tpu.core_type = #tpu.core_type<tc>, window_params = [{transform_indices = @transform_0, window_bounds = array<i64: 1, 8, 128>}, {transform_indices = @transform_1, window_bounds = array<i64: 1, 1024, 128>}, {transform_indices = @transform_2, window_bounds = array<i64: 1, 1, 1024>}, {pipeline_mode = #tpu.pipeline_mode<synchronous>, transform_indices = @transform_3, window_bounds = array<i64: 128, 128>}, {pipeline_mode = #tpu.pipeline_mode<synchronous>, transform_indices = @transform_4, window_bounds = array<i64: 128, 128>}, {pipeline_mode = #tpu.pipeline_mode<synchronous>, transform_indices = @transform_5, window_bounds = array<i64: 1, 128>}, {transform_indices = @transform_6, window_bounds = array<i64: 1, 8, 128>}, {transform_indices = @transform_7, window_bounds = array<i64: 1, 8, 1024>}, {transform_indices = @transform_8, window_bounds = array<i64: 1, 8, 8>}]} {
    %0 = tpu.iota {dimensions = array<i32: 1>} : vector<8x8xi32>
    %c0 = arith.constant 0 : index
    %c0_0 = arith.constant 0 : index
    %c0_1 = arith.constant 0 : index
    %1 = vector.load %arg1[%c0, %c0_0, %c0_1] : memref<1x8x128xf32, #tpu.memory_space<vmem>>, vector<1x8x128xf32>
    %2 = vector.shape_cast %1 : vector<1x8x128xf32> to vector<8x128xf32>
    %3 = arith.truncf %2 : vector<8x128xf32> to vector<8x128xbf16>
    %c0_2 = arith.constant 0 : index
    %c0_3 = arith.constant 0 : index
    %c0_4 = arith.constant 0 : index
    %4 = vector.load %arg2[%c0_2, %c0_3, %c0_4] : memref<1x1024x128xf32, #tpu.memory_space<vmem>>, vector<1x1024x128xf32>
    %5 = vector.shape_cast %4 : vector<1x1024x128xf32> to vector<1024x128xf32>
    %6 = arith.truncf %5 : vector<1024x128xf32> to vector<1024x128xbf16>
    %cst = arith.constant dense<0.000000e+00> : vector<8x1024xf32>
    %7 = tpu.matmul %3, %6, %cst {dimension_numbers = #tpu.dot_dimension_numbers<[1], [1], [0], [0], [0, 0, 1, 0], [], []>} : vector<8x128xbf16>, vector<1024x128xbf16>, vector<8x1024xf32> -> vector<8x1024xf32>
    %c0_5 = arith.constant 0 : index
    %c0_6 = arith.constant 0 : index
    %c0_7 = arith.constant 0 : index
    %8 = vector.load %arg3[%c0_5, %c0_6, %c0_7] : memref<1x1x1024xi32, #tpu.memory_space<vmem>>, vector<1x1x1024xi32>
    %9 = vector.shape_cast %8 : vector<1x1x1024xi32> to vector<1x1024xi32>
    %c0_i32 = arith.constant 0 : i32
    %10 = vector.broadcast %c0_i32 : i32 to vector<1x1024xi32>
    %11 = arith.cmpi ne, %9, %10 : vector<1x1024xi32>
    %cst_8 = arith.constant -1.000000e+30 : f32
    %cst_9 = arith.constant 0.000000e+00 : f32
    %12 = vector.broadcast %cst_8 : f32 to vector<1x1024xf32>
    %13 = vector.broadcast %cst_9 : f32 to vector<1x1024xf32>
    %14 = arith.select %11, %12, %13 : vector<1x1024xi1>, vector<1x1024xf32>
    %15 = vector.broadcast %14 : vector<1x1024xf32> to vector<8x1024xf32>
    %16 = arith.addf %7, %15 : vector<8x1024xf32>
    %cst_10 = arith.constant 0.000000e+00 : f32
    %17 = vector.broadcast %cst_10 : f32 to vector<8x128xf32>
    %cst_11 = arith.constant 0.000000e+00 : f32
    %18 = vector.broadcast %cst_11 : f32 to vector<8x8xf32>
    %19 = vector.extract_strided_slice %16 {offsets = [0, 0], sizes = [8, 128], strides = [1, 1]} : vector<8x1024xf32> to vector<8x128xf32>
    %cst_12 = arith.constant dense<0xFF800000> : vector<8xf32>
    %20 = vector.multi_reduction <maximumf>, %19, %cst_12 [1] : vector<8x128xf32> to vector<8xf32>
    %21 = vector.shape_cast %20 : vector<8xf32> to vector<8x1xf32>
    %22 = vector.broadcast %21 : vector<8x1xf32> to vector<8x128xf32>
    %23 = arith.subf %19, %22 : vector<8x128xf32>
    %24 = math.exp %23 : vector<8x128xf32>
    %cst_13 = arith.constant dense<0.000000e+00> : vector<8xf32>
    %25 = vector.multi_reduction <add>, %24, %cst_13 [1] : vector<8x128xf32> to vector<8xf32>
    %26 = vector.shape_cast %25 : vector<8xf32> to vector<8x1xf32>
    %27 = tpu.reciprocal %26 {approx = true} : vector<8x1xf32> -> vector<8x1xf32>
    %28 = vector.broadcast %27 : vector<8x1xf32> to vector<8x128xf32>
    %29 = arith.mulf %24, %28 : vector<8x128xf32>
    %30 = arith.truncf %29 : vector<8x128xf32> to vector<8x128xbf16>
    %c0_14 = arith.constant 0 : index
    %c0_15 = arith.constant 0 : index
    %c0_16 = arith.constant 0 : index
    %31 = vector.load %arg8[%c0_14, %c0_15, %c0_16] : memref<1x8x1024xbf16, #tpu.memory_space<vmem>>, vector<1x8x128xbf16>
    %32 = vector.shape_cast %31 : vector<1x8x128xbf16> to vector<8x128xbf16>
    %33 = vector.shape_cast %30 : vector<8x128xbf16> to vector<1x8x128xbf16>
    tpu.vector_store %arg8[%c0_14, %c0_15, %c0_16], %33 {strides = array<i32>} : memref<1x8x1024xbf16, #tpu.memory_space<vmem>>, vector<1x8x128xbf16>,
    %34 = vector.extract_strided_slice %6 {offsets = [0, 0], sizes = [128, 128], strides = [1, 1]} : vector<1024x128xbf16> to vector<128x128xbf16>
    %35 = arith.truncf %29 : vector<8x128xf32> to vector<8x128xbf16>
    %cst_17 = arith.constant dense<0.000000e+00> : vector<8x128xf32>
    %36 = tpu.matmul %35, %34, %cst_17 {dimension_numbers = #tpu.dot_dimension_numbers<[1], [0], [0], [1], [0, 0, 1, 1], [], []>} : vector<8x128xbf16>, vector<128x128xbf16>, vector<8x128xf32> -> vector<8x128xf32>
    %37 = arith.mulf %2, %36 : vector<8x128xf32>
    %cst_18 = arith.constant dense<0.000000e+00> : vector<8xf32>
    %38 = vector.multi_reduction <add>, %37, %cst_18 [1] : vector<8x128xf32> to vector<8xf32>
    %39 = vector.shape_cast %38 : vector<8xf32> to vector<8x1xf32>
    %c0_i32_19 = arith.constant 0 : i32
    %40 = vector.broadcast %c0_i32_19 : i32 to vector<8x8xi32>
    %41 = arith.cmpi eq, %0, %40 : vector<8x8xi32>
    %cst_20 = arith.constant 0.000000e+00 : f32
    %42 = vector.shape_cast %39 : vector<8x1xf32> to vector<8x1xf32>
    %43 = vector.broadcast %42 : vector<8x1xf32> to vector<8x8xf32>
    %44 = vector.broadcast %cst_20 : f32 to vector<8x8xf32>
    %45 = arith.select %41, %43, %44 : vector<8x8xi1>, vector<8x8xf32>
    %46 = arith.addf %18, %45 : vector<8x8xf32>
    %47 = vector.broadcast %39 : vector<8x1xf32> to vector<8x128xf32>
    %48 = arith.mulf %47, %36 : vector<8x128xf32>
    %49 = arith.addf %17, %48 : vector<8x128xf32>
    %50 = vector.extract_strided_slice %16 {offsets = [0, 128], sizes = [8, 128], strides = [1, 1]} : vector<8x1024xf32> to vector<8x128xf32>
    %cst_21 = arith.constant dense<0xFF800000> : vector<8xf32>
    %51 = vector.multi_reduction <maximumf>, %50, %cst_21 [1] : vector<8x128xf32> to vector<8xf32>
    %52 = vector.shape_cast %51 : vector<8xf32> to vector<8x1xf32>
    %53 = vector.broadcast %52 : vector<8x1xf32> to vector<8x128xf32>
    %54 = arith.subf %50, %53 : vector<8x128xf32>
    %55 = math.exp %54 : vector<8x128xf32>
    %cst_22 = arith.constant dense<0.000000e+00> : vector<8xf32>
    %56 = vector.multi_reduction <add>, %55, %cst_22 [1] : vector<8x128xf32> to vector<8xf32>
    %57 = vector.shape_cast %56 : vector<8xf32> to vector<8x1xf32>
    %58 = tpu.reciprocal %57 {approx = true} : vector<8x1xf32> -> vector<8x1xf32>
    %59 = vector.broadcast %58 : vector<8x1xf32> to vector<8x128xf32>
    %60 = arith.mulf %55, %59 : vector<8x128xf32>
    %61 = arith.truncf %60 : vector<8x128xf32> to vector<8x128xbf16>
    %c0_23 = arith.constant 0 : index
    %c0_24 = arith.constant 0 : index
    %c128 = arith.constant 128 : index
    %62 = vector.load %arg8[%c0_23, %c0_24, %c128] : memref<1x8x1024xbf16, #tpu.memory_space<vmem>>, vector<1x8x128xbf16>
    %63 = vector.shape_cast %62 : vector<1x8x128xbf16> to vector<8x128xbf16>
    %64 = vector.shape_cast %61 : vector<8x128xbf16> to vector<1x8x128xbf16>
    tpu.vector_store %arg8[%c0_23, %c0_24, %c128], %64 {strides = array<i32>} : memref<1x8x1024xbf16, #tpu.memory_space<vmem>>, vector<1x8x128xbf16>,
    %65 = vector.extract_strided_slice %6 {offsets = [128, 0], sizes = [128, 128], strides = [1, 1]} : vector<1024x128xbf16> to vector<128x128xbf16>
    %66 = arith.truncf %60 : vector<8x128xf32> to vector<8x128xbf16>
    %cst_25 = arith.constant dense<0.000000e+00> : vector<8x128xf32>
    %67 = tpu.matmul %66, %65, %cst_25 {dimension_numbers = #tpu.dot_dimension_numbers<[1], [0], [0], [1], [0, 0, 1, 1], [], []>} : vector<8x128xbf16>, vector<128x128xbf16>, vector<8x128xf32> -> vector<8x128xf32>
    %68 = arith.mulf %2, %67 : vector<8x128xf32>
    %cst_26 = arith.constant dense<0.000000e+00> : vector<8xf32>
    %69 = vector.multi_reduction <add>, %68, %cst_26 [1] : vector<8x128xf32> to vector<8xf32>
    %70 = vector.shape_cast %69 : vector<8xf32> to vector<8x1xf32>
    %c1_i32 = arith.constant 1 : i32
    %71 = vector.broadcast %c1_i32 : i32 to vector<8x8xi32>
    %72 = arith.cmpi eq, %0, %71 : vector<8x8xi32>
    %cst_27 = arith.constant 0.000000e+00 : f32
    %73 = vector.shape_cast %70 : vector<8x1xf32> to vector<8x1xf32>
    %74 = vector.broadcast %73 : vector<8x1xf32> to vector<8x8xf32>
    %75 = vector.broadcast %cst_27 : f32 to vector<8x8xf32>
    %76 = arith.select %72, %74, %75 : vector<8x8xi1>, vector<8x8xf32>
    %77 = arith.addf %46, %76 : vector<8x8xf32>
    %78 = vector.broadcast %70 : vector<8x1xf32> to vector<8x128xf32>
    %79 = arith.mulf %78, %67 : vector<8x128xf32>
    %80 = arith.addf %49, %79 : vector<8x128xf32>
    %81 = vector.extract_strided_slice %16 {offsets = [0, 256], sizes = [8, 128], strides = [1, 1]} : vector<8x1024xf32> to vector<8x128xf32>
    %cst_28 = arith.constant dense<0xFF800000> : vector<8xf32>
    %82 = vector.multi_reduction <maximumf>, %81, %cst_28 [1] : vector<8x128xf32> to vector<8xf32>
    %83 = vector.shape_cast %82 : vector<8xf32> to vector<8x1xf32>
    %84 = vector.broadcast %83 : vector<8x1xf32> to vector<8x128xf32>
    %85 = arith.subf %81, %84 : vector<8x128xf32>
    %86 = math.exp %85 : vector<8x128xf32>
    %cst_29 = arith.constant dense<0.000000e+00> : vector<8xf32>
    %87 = vector.multi_reduction <add>, %86, %cst_29 [1] : vector<8x128xf32> to vector<8xf32>
    %88 = vector.shape_cast %87 : vector<8xf32> to vector<8x1xf32>
    %89 = tpu.reciprocal %88 {approx = true} : vector<8x1xf32> -> vector<8x1xf32>
    %90 = vector.broadcast %89 : vector<8x1xf32> to vector<8x128xf32>
    %91 = arith.mulf %86, %90 : vector<8x128xf32>
    %92 = arith.truncf %91 : vector<8x128xf32> to vector<8x128xbf16>
    %c0_30 = arith.constant 0 : index
    %c0_31 = arith.constant 0 : index
    %c256 = arith.constant 256 : index
    %93 = vector.load %arg8[%c0_30, %c0_31, %c256] : memref<1x8x1024xbf16, #tpu.memory_space<vmem>>, vector<1x8x128xbf16>
    %94 = vector.shape_cast %93 : vector<1x8x128xbf16> to vector<8x128xbf16>
    %95 = vector.shape_cast %92 : vector<8x128xbf16> to vector<1x8x128xbf16>
    tpu.vector_store %arg8[%c0_30, %c0_31, %c256], %95 {strides = array<i32>} : memref<1x8x1024xbf16, #tpu.memory_space<vmem>>, vector<1x8x128xbf16>,
    %96 = vector.extract_strided_slice %6 {offsets = [256, 0], sizes = [128, 128], strides = [1, 1]} : vector<1024x128xbf16> to vector<128x128xbf16>
    %97 = arith.truncf %91 : vector<8x128xf32> to vector<8x128xbf16>
    %cst_32 = arith.constant dense<0.000000e+00> : vector<8x128xf32>
    %98 = tpu.matmul %97, %96, %cst_32 {dimension_numbers = #tpu.dot_dimension_numbers<[1], [0], [0], [1], [0, 0, 1, 1], [], []>} : vector<8x128xbf16>, vector<128x128xbf16>, vector<8x128xf32> -> vector<8x128xf32>
    %99 = arith.mulf %2, %98 : vector<8x128xf32>
    %cst_33 = arith.constant dense<0.000000e+00> : vector<8xf32>
    %100 = vector.multi_reduction <add>, %99, %cst_33 [1] : vector<8x128xf32> to vector<8xf32>
    %101 = vector.shape_cast %100 : vector<8xf32> to vector<8x1xf32>
    %c2_i32 = arith.constant 2 : i32
    %102 = vector.broadcast %c2_i32 : i32 to vector<8x8xi32>
    %103 = arith.cmpi eq, %0, %102 : vector<8x8xi32>
    %cst_34 = arith.constant 0.000000e+00 : f32
    %104 = vector.shape_cast %101 : vector<8x1xf32> to vector<8x1xf32>
    %105 = vector.broadcast %104 : vector<8x1xf32> to vector<8x8xf32>
    %106 = vector.broadcast %cst_34 : f32 to vector<8x8xf32>
    %107 = arith.select %103, %105, %106 : vector<8x8xi1>, vector<8x8xf32>
    %108 = arith.addf %77, %107 : vector<8x8xf32>
    %109 = vector.broadcast %101 : vector<8x1xf32> to vector<8x128xf32>
    %110 = arith.mulf %109, %98 : vector<8x128xf32>
    %111 = arith.addf %80, %110 : vector<8x128xf32>
    %112 = vector.extract_strided_slice %16 {offsets = [0, 384], sizes = [8, 128], strides = [1, 1]} : vector<8x1024xf32> to vector<8x128xf32>
    %cst_35 = arith.constant dense<0xFF800000> : vector<8xf32>
    %113 = vector.multi_reduction <maximumf>, %112, %cst_35 [1] : vector<8x128xf32> to vector<8xf32>
    %114 = vector.shape_cast %113 : vector<8xf32> to vector<8x1xf32>
    %115 = vector.broadcast %114 : vector<8x1xf32> to vector<8x128xf32>
    %116 = arith.subf %112, %115 : vector<8x128xf32>
    %117 = math.exp %116 : vector<8x128xf32>
    %cst_36 = arith.constant dense<0.000000e+00> : vector<8xf32>
    %118 = vector.multi_reduction <add>, %117, %cst_36 [1] : vector<8x128xf32> to vector<8xf32>
    %119 = vector.shape_cast %118 : vector<8xf32> to vector<8x1xf32>
    %120 = tpu.reciprocal %119 {approx = true} : vector<8x1xf32> -> vector<8x1xf32>
    %121 = vector.broadcast %120 : vector<8x1xf32> to vector<8x128xf32>
    %122 = arith.mulf %117, %121 : vector<8x128xf32>
    %123 = arith.truncf %122 : vector<8x128xf32> to vector<8x128xbf16>
    %c0_37 = arith.constant 0 : index
    %c0_38 = arith.constant 0 : index
    %c384 = arith.constant 384 : index
    %124 = vector.load %arg8[%c0_37, %c0_38, %c384] : memref<1x8x1024xbf16, #tpu.memory_space<vmem>>, vector<1x8x128xbf16>
    %125 = vector.shape_cast %124 : vector<1x8x128xbf16> to vector<8x128xbf16>
    %126 = vector.shape_cast %123 : vector<8x128xbf16> to vector<1x8x128xbf16>
    tpu.vector_store %arg8[%c0_37, %c0_38, %c384], %126 {strides = array<i32>} : memref<1x8x1024xbf16, #tpu.memory_space<vmem>>, vector<1x8x128xbf16>,
    %127 = vector.extract_strided_slice %6 {offsets = [384, 0], sizes = [128, 128], strides = [1, 1]} : vector<1024x128xbf16> to vector<128x128xbf16>
    %128 = arith.truncf %122 : vector<8x128xf32> to vector<8x128xbf16>
    %cst_39 = arith.constant dense<0.000000e+00> : vector<8x128xf32>
    %129 = tpu.matmul %128, %127, %cst_39 {dimension_numbers = #tpu.dot_dimension_numbers<[1], [0], [0], [1], [0, 0, 1, 1], [], []>} : vector<8x128xbf16>, vector<128x128xbf16>, vector<8x128xf32> -> vector<8x128xf32>
    %130 = arith.mulf %2, %129 : vector<8x128xf32>
    %cst_40 = arith.constant dense<0.000000e+00> : vector<8xf32>
    %131 = vector.multi_reduction <add>, %130, %cst_40 [1] : vector<8x128xf32> to vector<8xf32>
    %132 = vector.shape_cast %131 : vector<8xf32> to vector<8x1xf32>
    %c3_i32 = arith.constant 3 : i32
    %133 = vector.broadcast %c3_i32 : i32 to vector<8x8xi32>
    %134 = arith.cmpi eq, %0, %133 : vector<8x8xi32>
    %cst_41 = arith.constant 0.000000e+00 : f32
    %135 = vector.shape_cast %132 : vector<8x1xf32> to vector<8x1xf32>
    %136 = vector.broadcast %135 : vector<8x1xf32> to vector<8x8xf32>
    %137 = vector.broadcast %cst_41 : f32 to vector<8x8xf32>
    %138 = arith.select %134, %136, %137 : vector<8x8xi1>, vector<8x8xf32>
    %139 = arith.addf %108, %138 : vector<8x8xf32>
    %140 = vector.broadcast %132 : vector<8x1xf32> to vector<8x128xf32>
    %141 = arith.mulf %140, %129 : vector<8x128xf32>
    %142 = arith.addf %111, %141 : vector<8x128xf32>
    %143 = vector.extract_strided_slice %16 {offsets = [0, 512], sizes = [8, 128], strides = [1, 1]} : vector<8x1024xf32> to vector<8x128xf32>
    %cst_42 = arith.constant dense<0xFF800000> : vector<8xf32>
    %144 = vector.multi_reduction <maximumf>, %143, %cst_42 [1] : vector<8x128xf32> to vector<8xf32>
    %145 = vector.shape_cast %144 : vector<8xf32> to vector<8x1xf32>
    %146 = vector.broadcast %145 : vector<8x1xf32> to vector<8x128xf32>
    %147 = arith.subf %143, %146 : vector<8x128xf32>
    %148 = math.exp %147 : vector<8x128xf32>
    %cst_43 = arith.constant dense<0.000000e+00> : vector<8xf32>
    %149 = vector.multi_reduction <add>, %148, %cst_43 [1] : vector<8x128xf32> to vector<8xf32>
    %150 = vector.shape_cast %149 : vector<8xf32> to vector<8x1xf32>
    %151 = tpu.reciprocal %150 {approx = true} : vector<8x1xf32> -> vector<8x1xf32>
    %152 = vector.broadcast %151 : vector<8x1xf32> to vector<8x128xf32>
    %153 = arith.mulf %148, %152 : vector<8x128xf32>
    %154 = arith.truncf %153 : vector<8x128xf32> to vector<8x128xbf16>
    %c0_44 = arith.constant 0 : index
    %c0_45 = arith.constant 0 : index
    %c512 = arith.constant 512 : index
    %155 = vector.load %arg8[%c0_44, %c0_45, %c512] : memref<1x8x1024xbf16, #tpu.memory_space<vmem>>, vector<1x8x128xbf16>
    %156 = vector.shape_cast %155 : vector<1x8x128xbf16> to vector<8x128xbf16>
    %157 = vector.shape_cast %154 : vector<8x128xbf16> to vector<1x8x128xbf16>
    tpu.vector_store %arg8[%c0_44, %c0_45, %c512], %157 {strides = array<i32>} : memref<1x8x1024xbf16, #tpu.memory_space<vmem>>, vector<1x8x128xbf16>,
    %158 = vector.extract_strided_slice %6 {offsets = [512, 0], sizes = [128, 128], strides = [1, 1]} : vector<1024x128xbf16> to vector<128x128xbf16>
    %159 = arith.truncf %153 : vector<8x128xf32> to vector<8x128xbf16>
    %cst_46 = arith.constant dense<0.000000e+00> : vector<8x128xf32>
    %160 = tpu.matmul %159, %158, %cst_46 {dimension_numbers = #tpu.dot_dimension_numbers<[1], [0], [0], [1], [0, 0, 1, 1], [], []>} : vector<8x128xbf16>, vector<128x128xbf16>, vector<8x128xf32> -> vector<8x128xf32>
    %161 = arith.mulf %2, %160 : vector<8x128xf32>
    %cst_47 = arith.constant dense<0.000000e+00> : vector<8xf32>
    %162 = vector.multi_reduction <add>, %161, %cst_47 [1] : vector<8x128xf32> to vector<8xf32>
    %163 = vector.shape_cast %162 : vector<8xf32> to vector<8x1xf32>
    %c4_i32 = arith.constant 4 : i32
    %164 = vector.broadcast %c4_i32 : i32 to vector<8x8xi32>
    %165 = arith.cmpi eq, %0, %164 : vector<8x8xi32>
    %cst_48 = arith.constant 0.000000e+00 : f32
    %166 = vector.shape_cast %163 : vector<8x1xf32> to vector<8x1xf32>
    %167 = vector.broadcast %166 : vector<8x1xf32> to vector<8x8xf32>
    %168 = vector.broadcast %cst_48 : f32 to vector<8x8xf32>
    %169 = arith.select %165, %167, %168 : vector<8x8xi1>, vector<8x8xf32>
    %170 = arith.addf %139, %169 : vector<8x8xf32>
    %171 = vector.broadcast %163 : vector<8x1xf32> to vector<8x128xf32>
    %172 = arith.mulf %171, %160 : vector<8x128xf32>
    %173 = arith.addf %142, %172 : vector<8x128xf32>
    %174 = vector.extract_strided_slice %16 {offsets = [0, 640], sizes = [8, 128], strides = [1, 1]} : vector<8x1024xf32> to vector<8x128xf32>
    %cst_49 = arith.constant dense<0xFF800000> : vector<8xf32>
    %175 = vector.multi_reduction <maximumf>, %174, %cst_49 [1] : vector<8x128xf32> to vector<8xf32>
    %176 = vector.shape_cast %175 : vector<8xf32> to vector<8x1xf32>
    %177 = vector.broadcast %176 : vector<8x1xf32> to vector<8x128xf32>
    %178 = arith.subf %174, %177 : vector<8x128xf32>
    %179 = math.exp %178 : vector<8x128xf32>
    %cst_50 = arith.constant dense<0.000000e+00> : vector<8xf32>
    %180 = vector.multi_reduction <add>, %179, %cst_50 [1] : vector<8x128xf32> to vector<8xf32>
    %181 = vector.shape_cast %180 : vector<8xf32> to vector<8x1xf32>
    %182 = tpu.reciprocal %181 {approx = true} : vector<8x1xf32> -> vector<8x1xf32>
    %183 = vector.broadcast %182 : vector<8x1xf32> to vector<8x128xf32>
    %184 = arith.mulf %179, %183 : vector<8x128xf32>
    %185 = arith.truncf %184 : vector<8x128xf32> to vector<8x128xbf16>
    %c0_51 = arith.constant 0 : index
    %c0_52 = arith.constant 0 : index
    %c640 = arith.constant 640 : index
    %186 = vector.load %arg8[%c0_51, %c0_52, %c640] : memref<1x8x1024xbf16, #tpu.memory_space<vmem>>, vector<1x8x128xbf16>
    %187 = vector.shape_cast %186 : vector<1x8x128xbf16> to vector<8x128xbf16>
    %188 = vector.shape_cast %185 : vector<8x128xbf16> to vector<1x8x128xbf16>
    tpu.vector_store %arg8[%c0_51, %c0_52, %c640], %188 {strides = array<i32>} : memref<1x8x1024xbf16, #tpu.memory_space<vmem>>, vector<1x8x128xbf16>,
    %189 = vector.extract_strided_slice %6 {offsets = [640, 0], sizes = [128, 128], strides = [1, 1]} : vector<1024x128xbf16> to vector<128x128xbf16>
    %190 = arith.truncf %184 : vector<8x128xf32> to vector<8x128xbf16>
    %cst_53 = arith.constant dense<0.000000e+00> : vector<8x128xf32>
    %191 = tpu.matmul %190, %189, %cst_53 {dimension_numbers = #tpu.dot_dimension_numbers<[1], [0], [0], [1], [0, 0, 1, 1], [], []>} : vector<8x128xbf16>, vector<128x128xbf16>, vector<8x128xf32> -> vector<8x128xf32>
    %192 = arith.mulf %2, %191 : vector<8x128xf32>
    %cst_54 = arith.constant dense<0.000000e+00> : vector<8xf32>
    %193 = vector.multi_reduction <add>, %192, %cst_54 [1] : vector<8x128xf32> to vector<8xf32>
    %194 = vector.shape_cast %193 : vector<8xf32> to vector<8x1xf32>
    %c5_i32 = arith.constant 5 : i32
    %195 = vector.broadcast %c5_i32 : i32 to vector<8x8xi32>
    %196 = arith.cmpi eq, %0, %195 : vector<8x8xi32>
    %cst_55 = arith.constant 0.000000e+00 : f32
    %197 = vector.shape_cast %194 : vector<8x1xf32> to vector<8x1xf32>
    %198 = vector.broadcast %197 : vector<8x1xf32> to vector<8x8xf32>
    %199 = vector.broadcast %cst_55 : f32 to vector<8x8xf32>
    %200 = arith.select %196, %198, %199 : vector<8x8xi1>, vector<8x8xf32>
    %201 = arith.addf %170, %200 : vector<8x8xf32>
    %202 = vector.broadcast %194 : vector<8x1xf32> to vector<8x128xf32>
    %203 = arith.mulf %202, %191 : vector<8x128xf32>
    %204 = arith.addf %173, %203 : vector<8x128xf32>
    %205 = vector.extract_strided_slice %16 {offsets = [0, 768], sizes = [8, 128], strides = [1, 1]} : vector<8x1024xf32> to vector<8x128xf32>
    %cst_56 = arith.constant dense<0xFF800000> : vector<8xf32>
    %206 = vector.multi_reduction <maximumf>, %205, %cst_56 [1] : vector<8x128xf32> to vector<8xf32>
    %207 = vector.shape_cast %206 : vector<8xf32> to vector<8x1xf32>
    %208 = vector.broadcast %207 : vector<8x1xf32> to vector<8x128xf32>
    %209 = arith.subf %205, %208 : vector<8x128xf32>
    %210 = math.exp %209 : vector<8x128xf32>
    %cst_57 = arith.constant dense<0.000000e+00> : vector<8xf32>
    %211 = vector.multi_reduction <add>, %210, %cst_57 [1] : vector<8x128xf32> to vector<8xf32>
    %212 = vector.shape_cast %211 : vector<8xf32> to vector<8x1xf32>
    %213 = tpu.reciprocal %212 {approx = true} : vector<8x1xf32> -> vector<8x1xf32>
    %214 = vector.broadcast %213 : vector<8x1xf32> to vector<8x128xf32>
    %215 = arith.mulf %210, %214 : vector<8x128xf32>
    %216 = arith.truncf %215 : vector<8x128xf32> to vector<8x128xbf16>
    %c0_58 = arith.constant 0 : index
    %c0_59 = arith.constant 0 : index
    %c768 = arith.constant 768 : index
    %217 = vector.load %arg8[%c0_58, %c0_59, %c768] : memref<1x8x1024xbf16, #tpu.memory_space<vmem>>, vector<1x8x128xbf16>
    %218 = vector.shape_cast %217 : vector<1x8x128xbf16> to vector<8x128xbf16>
    %219 = vector.shape_cast %216 : vector<8x128xbf16> to vector<1x8x128xbf16>
    tpu.vector_store %arg8[%c0_58, %c0_59, %c768], %219 {strides = array<i32>} : memref<1x8x1024xbf16, #tpu.memory_space<vmem>>, vector<1x8x128xbf16>,
    %220 = vector.extract_strided_slice %6 {offsets = [768, 0], sizes = [128, 128], strides = [1, 1]} : vector<1024x128xbf16> to vector<128x128xbf16>
    %221 = arith.truncf %215 : vector<8x128xf32> to vector<8x128xbf16>
    %cst_60 = arith.constant dense<0.000000e+00> : vector<8x128xf32>
    %222 = tpu.matmul %221, %220, %cst_60 {dimension_numbers = #tpu.dot_dimension_numbers<[1], [0], [0], [1], [0, 0, 1, 1], [], []>} : vector<8x128xbf16>, vector<128x128xbf16>, vector<8x128xf32> -> vector<8x128xf32>
    %223 = arith.mulf %2, %222 : vector<8x128xf32>
    %cst_61 = arith.constant dense<0.000000e+00> : vector<8xf32>
    %224 = vector.multi_reduction <add>, %223, %cst_61 [1] : vector<8x128xf32> to vector<8xf32>
    %225 = vector.shape_cast %224 : vector<8xf32> to vector<8x1xf32>
    %c6_i32 = arith.constant 6 : i32
    %226 = vector.broadcast %c6_i32 : i32 to vector<8x8xi32>
    %227 = arith.cmpi eq, %0, %226 : vector<8x8xi32>
    %cst_62 = arith.constant 0.000000e+00 : f32
    %228 = vector.shape_cast %225 : vector<8x1xf32> to vector<8x1xf32>
    %229 = vector.broadcast %228 : vector<8x1xf32> to vector<8x8xf32>
    %230 = vector.broadcast %cst_62 : f32 to vector<8x8xf32>
    %231 = arith.select %227, %229, %230 : vector<8x8xi1>, vector<8x8xf32>
    %232 = arith.addf %201, %231 : vector<8x8xf32>
    %233 = vector.broadcast %225 : vector<8x1xf32> to vector<8x128xf32>
    %234 = arith.mulf %233, %222 : vector<8x128xf32>
    %235 = arith.addf %204, %234 : vector<8x128xf32>
    %236 = vector.extract_strided_slice %16 {offsets = [0, 896], sizes = [8, 128], strides = [1, 1]} : vector<8x1024xf32> to vector<8x128xf32>
    %cst_63 = arith.constant dense<0xFF800000> : vector<8xf32>
    %237 = vector.multi_reduction <maximumf>, %236, %cst_63 [1] : vector<8x128xf32> to vector<8xf32>
    %238 = vector.shape_cast %237 : vector<8xf32> to vector<8x1xf32>
    %239 = vector.broadcast %238 : vector<8x1xf32> to vector<8x128xf32>
    %240 = arith.subf %236, %239 : vector<8x128xf32>
    %241 = math.exp %240 : vector<8x128xf32>
    %cst_64 = arith.constant dense<0.000000e+00> : vector<8xf32>
    %242 = vector.multi_reduction <add>, %241, %cst_64 [1] : vector<8x128xf32> to vector<8xf32>
    %243 = vector.shape_cast %242 : vector<8xf32> to vector<8x1xf32>
    %244 = tpu.reciprocal %243 {approx = true} : vector<8x1xf32> -> vector<8x1xf32>
    %245 = vector.broadcast %244 : vector<8x1xf32> to vector<8x128xf32>
    %246 = arith.mulf %241, %245 : vector<8x128xf32>
    %247 = arith.truncf %246 : vector<8x128xf32> to vector<8x128xbf16>
    %c0_65 = arith.constant 0 : index
    %c0_66 = arith.constant 0 : index
    %c896 = arith.constant 896 : index
    %248 = vector.load %arg8[%c0_65, %c0_66, %c896] : memref<1x8x1024xbf16, #tpu.memory_space<vmem>>, vector<1x8x128xbf16>
    %249 = vector.shape_cast %248 : vector<1x8x128xbf16> to vector<8x128xbf16>
    %250 = vector.shape_cast %247 : vector<8x128xbf16> to vector<1x8x128xbf16>
    tpu.vector_store %arg8[%c0_65, %c0_66, %c896], %250 {strides = array<i32>} : memref<1x8x1024xbf16, #tpu.memory_space<vmem>>, vector<1x8x128xbf16>,
    %251 = vector.extract_strided_slice %6 {offsets = [896, 0], sizes = [128, 128], strides = [1, 1]} : vector<1024x128xbf16> to vector<128x128xbf16>
    %252 = arith.truncf %246 : vector<8x128xf32> to vector<8x128xbf16>
    %cst_67 = arith.constant dense<0.000000e+00> : vector<8x128xf32>
    %253 = tpu.matmul %252, %251, %cst_67 {dimension_numbers = #tpu.dot_dimension_numbers<[1], [0], [0], [1], [0, 0, 1, 1], [], []>} : vector<8x128xbf16>, vector<128x128xbf16>, vector<8x128xf32> -> vector<8x128xf32>
    %254 = arith.mulf %2, %253 : vector<8x128xf32>
    %cst_68 = arith.constant dense<0.000000e+00> : vector<8xf32>
    %255 = vector.multi_reduction <add>, %254, %cst_68 [1] : vector<8x128xf32> to vector<8xf32>
    %256 = vector.shape_cast %255 : vector<8xf32> to vector<8x1xf32>
    %c7_i32 = arith.constant 7 : i32
    %257 = vector.broadcast %c7_i32 : i32 to vector<8x8xi32>
    %258 = arith.cmpi eq, %0, %257 : vector<8x8xi32>
    %cst_69 = arith.constant 0.000000e+00 : f32
    %259 = vector.shape_cast %256 : vector<8x1xf32> to vector<8x1xf32>
    %260 = vector.broadcast %259 : vector<8x1xf32> to vector<8x8xf32>
    %261 = vector.broadcast %cst_69 : f32 to vector<8x8xf32>
    %262 = arith.select %258, %260, %261 : vector<8x8xi1>, vector<8x8xf32>
    %263 = arith.addf %232, %262 : vector<8x8xf32>
    %264 = vector.broadcast %256 : vector<8x1xf32> to vector<8x128xf32>
    %265 = arith.mulf %264, %253 : vector<8x128xf32>
    %266 = arith.addf %235, %265 : vector<8x128xf32>
    %c0_70 = arith.constant 0 : index
    %c0_71 = arith.constant 0 : index
    %c0_72 = arith.constant 0 : index
    %267 = vector.load %arg9[%c0_70, %c0_71, %c0_72] : memref<1x8x8xf32, #tpu.memory_space<vmem>>, vector<1x8x8xf32>
    %268 = vector.shape_cast %267 : vector<1x8x8xf32> to vector<8x8xf32>
    %269 = vector.shape_cast %263 : vector<8x8xf32> to vector<1x8x8xf32>
    tpu.vector_store %arg9[%c0_70, %c0_71, %c0_72], %269 {strides = array<i32>} : memref<1x8x8xf32, #tpu.memory_space<vmem>>, vector<1x8x8xf32>,
    %270 = arith.truncf %266 : vector<8x128xf32> to vector<8x128xbf16>
    %c0_73 = arith.constant 0 : index
    %c0_74 = arith.constant 0 : index
    %271 = vector.load %arg4[%c0_73, %c0_74] : memref<128x128xbf16, #tpu.memory_space<vmem>>, vector<128x128xbf16>
    %cst_75 = arith.constant dense<0.000000e+00> : vector<8x128xf32>
    %272 = tpu.matmul %270, %271, %cst_75 {dimension_numbers = #tpu.dot_dimension_numbers<[1], [0], [0], [1], [0, 0, 1, 1], [], []>} : vector<8x128xbf16>, vector<128x128xbf16>, vector<8x128xf32> -> vector<8x128xf32>
    %c0_76 = arith.constant 0 : index
    %c0_77 = arith.constant 0 : index
    %273 = vector.load %arg5[%c0_76, %c0_77] : memref<128x128xbf16, #tpu.memory_space<vmem>>, vector<128x128xbf16>
    %cst_78 = arith.constant dense<0.000000e+00> : vector<8x128xf32>
    %274 = tpu.matmul %3, %273, %cst_78 {dimension_numbers = #tpu.dot_dimension_numbers<[1], [0], [0], [1], [0, 0, 1, 1], [], []>} : vector<8x128xbf16>, vector<128x128xbf16>, vector<8x128xf32> -> vector<8x128xf32>
    %275 = arith.addf %272, %274 : vector<8x128xf32>
    %c0_79 = arith.constant 0 : index
    %c0_80 = arith.constant 0 : index
    %276 = vector.load %arg6[%c0_79, %c0_80] : memref<1x128xf32, #tpu.memory_space<vmem>>, vector<1x128xf32>
    %277 = vector.broadcast %276 : vector<1x128xf32> to vector<8x128xf32>
    %278 = arith.addf %275, %277 : vector<8x128xf32>
    %279 = math.tanh %278 : vector<8x128xf32>
    %c0_81 = arith.constant 0 : index
    %c0_82 = arith.constant 0 : index
    %c0_83 = arith.constant 0 : index
    %280 = vector.load %arg7[%c0_81, %c0_82, %c0_83] : memref<1x8x128xf32, #tpu.memory_space<vmem>>, vector<1x8x128xf32>
    %281 = vector.shape_cast %280 : vector<1x8x128xf32> to vector<8x128xf32>
    %282 = vector.shape_cast %279 : vector<8x128xf32> to vector<1x8x128xf32>
    tpu.vector_store %arg7[%c0_81, %c0_82, %c0_83], %282 {strides = array<i32>} : memref<1x8x128xf32, #tpu.memory_space<vmem>>, vector<1x8x128xf32>,
    return
  }
  func.func @transform_0(%arg0: i32) -> (i32, i32, i32) {
    %c0_i32 = arith.constant 0 : i32
    %c0_i32_0 = arith.constant 0 : i32
    %c0_i32_1 = arith.constant 0 : i32
    return %arg0, %c0_i32, %c0_i32_0 : i32, i32, i32
  }
  func.func @transform_1(%arg0: i32) -> (i32, i32, i32) {
    %c0_i32 = arith.constant 0 : i32
    %c0_i32_0 = arith.constant 0 : i32
    %c0_i32_1 = arith.constant 0 : i32
    return %arg0, %c0_i32, %c0_i32_0 : i32, i32, i32
  }
  func.func @transform_2(%arg0: i32) -> (i32, i32, i32) {
    %c0_i32 = arith.constant 0 : i32
    %c0_i32_0 = arith.constant 0 : i32
    %c0_i32_1 = arith.constant 0 : i32
    return %arg0, %c0_i32, %c0_i32_0 : i32, i32, i32
  }
  func.func @transform_3(%arg0: i32) -> (i32, i32) {
    %c0_i32 = arith.constant 0 : i32
    %c0_i32_0 = arith.constant 0 : i32
    %c0_i32_1 = arith.constant 0 : i32
    return %c0_i32, %c0_i32_0 : i32, i32
  }
  func.func @transform_4(%arg0: i32) -> (i32, i32) {
    %c0_i32 = arith.constant 0 : i32
    %c0_i32_0 = arith.constant 0 : i32
    %c0_i32_1 = arith.constant 0 : i32
    return %c0_i32, %c0_i32_0 : i32, i32
  }
  func.func @transform_5(%arg0: i32) -> (i32, i32) {
    %c0_i32 = arith.constant 0 : i32
    %c0_i32_0 = arith.constant 0 : i32
    %c0_i32_1 = arith.constant 0 : i32
    return %c0_i32, %c0_i32_0 : i32, i32
  }
  func.func @transform_6(%arg0: i32) -> (i32, i32, i32) {
    %c0_i32 = arith.constant 0 : i32
    %c0_i32_0 = arith.constant 0 : i32
    %c0_i32_1 = arith.constant 0 : i32
    return %arg0, %c0_i32, %c0_i32_0 : i32, i32, i32
  }
  func.func @transform_7(%arg0: i32) -> (i32, i32, i32) {
    %c0_i32 = arith.constant 0 : i32
    %c0_i32_0 = arith.constant 0 : i32
    %c0_i32_1 = arith.constant 0 : i32
    return %arg0, %c0_i32, %c0_i32_0 : i32, i32, i32
  }
  func.func @transform_8(%arg0: i32) -> (i32, i32, i32) {
    %c0_i32 = arith.constant 0 : i32
    %c0_i32_0 = arith.constant 0 : i32
    %c0_i32_1 = arith.constant 0 : i32
    return %arg0, %c0_i32, %c0_i32_0 : i32, i32, i32
  }
}

</mosaic_0001>

<bundles_post_ra>
// kernel: attention_forward.1
= control target key start
LH: loop header
LB: loop body
LE: loop exit
PB: predicated region body
PF: predicated region fallthrough
CT: control target
= control target key end

     0   :  { %14 = vsyncpa [#allocation3], 0  ;;  %s2804_s0 = inlined_call_operand.vmem [shape: f32[2,8,128], index: 0, kind: input, shape index: {}]   ;;  %s2805_s1 = inlined_call_operand.hbm [shape: f32[2,1024,128], index: 1, kind: input, shape index: {}]   ;;  %s2806_s2 = inlined_call_operand.vmem [shape: s32[2,1,1024], index: 2, kind: input, shape index: {}]   ;;  %s2807_s3 = inlined_call_operand.vmem [shape: bf16[128,128], index: 3, kind: input, shape index: {}]   ;;  %s2808_s4 = inlined_call_operand.vmem [shape: bf16[128,128], index: 4, kind: input, shape index: {}]   ;;  %s2809_s5 = inlined_call_operand.vmem [shape: f32[1,128], index: 5, kind: input, shape index: {}]   ;;  %s2810_s6 = inlined_call_operand.hbm [shape: f32[2,8,128], index: 6, kind: output, shape index: {0}]   ;;  %s2811_s7 = inlined_call_operand.vmem [shape: bf16[2,8,1024], index: 7, kind: output, shape index: {1}]   ;;  %s2812_s8 = inlined_call_operand.hbm [shape: f32[2,8,8], index: 8, kind: output, shape index: {2}]  }
   0x1   :  { %16 = vsyncpa [#allocation3 + $0x1], 0 }
   0x2   :  { %17 = vsyncpa [#allocation4], 0 }
   0x3   :  { %19 = vsyncpa [#allocation4 + $0x1], 0 }
   0x4   :  { %20 = vsyncpa [#allocation7], 0 }
   0x5   :  { %22 = vsyncpa [#allocation7 + $0x1], 0  ;;  %s2135_s27 = smov 0   ;;  %s2137_s28 = smov 0  }
   0x6   :  { %s2139_s29 = smov 0   ;;  %s2141_s30 = smov 0  }
   0x7 LB: > { %2838 = sst [smem:[#allocation11_spill]] %s2081_s29  ;;  %s2156_s9 = sadd.s32 4294967295, %s2085_s30   ;;  %s2085_s30 = sphi %s2141_s30, %s2895_s30   ;;  %s2081_s29 = sphi %s2139_s29, %s2892_s29   ;;  %s2077_s28 = sphi %s2137_s28, %s2894_s28   ;;  %s2073_s27 = sphi %s2135_s27, %s2893_s27  }
   0x8   : > { %s1766_s10 = sadd.s32 4294967294, %s2085_s30   ;;  %s2160_s11 = sadd.s32 1, %s2085_s30  }
   0x9   : > { %s61_s12 = sadd.s32 1, %s2081_s29  ;;  %s58_s13 = ssub.s32 %s2085_s30, %s2160_s11 }
   0xa   : > { %p68_p0 = scmp.ne.s32.totalorder %s2081_s29, %s2077_s28  ;;  %p59_p1 = scmp.eq.s32.totalorder %s58_s13, 0 }
   0xb   : > { %p69_p2 = scmp.eq.s32.totalorder %s2085_s30, 0  ;;  %p74_p3 = scmp.ne.s32.totalorder %s2077_s28, %s2073_s27 }
   0xc   : > { %p75_p4 = scmp.eq.s32.totalorder %s2156_s9, 0  ;;  %p187_p7 = scmp.eq.s32.totalorder %s2156_s9, 1 }
   0xd   : > { %s2172_s14 = scalar_select %p59_p1, %s2081_s29, %s61_s12  }
   0xe   : > { %p2174_p5 = por %p69_p2, %p68_p0  ;;  %p2178_p6 = por %p75_p4, %p74_p3 }
   0xf   : > { %2839 = sst [smem:[#allocation12_spill]] %s2172_s14  ;;  %p193_p8 = scmp.eq.s32.totalorder %s1766_s10, 1 }
  0x10   : > { %p1885_p10 = scmp.lt.s32.totalorder %s2085_s30, 2  ;;  %p2185_p11 = por %p187_p7, %p68_p0 }
  0x11   : > { %p2189_p12 = por %p193_p8, %p74_p3  ;;  %s281_s19 = sand.u32 1, %s2081_s29  }
  0x12   : > { %s1850_s20 = sshll.u32 %s2085_s30, 10  ;;  %s1769_s21 = sshll.u32 %s281_s19, 10 }
  0x13   : > { %s290_s24 = scalar_lea.hbm %s2805_s1, %s1850_s20  ;;  %s285_s26 = scalar_lea.vmem [#allocation2], %s1769_s21 }
  0x14   : > { %s291_s25 = sshll.u32 %s290_s24, 4  ;;  %s293_s10 = sshll.u32 %s285_s26, 4  ;;  %s292_s25 = int_to_ptr.hbm [resolvable:$true] %s291_s25  ;;  %s294_s10 = int_to_ptr.vmem [resolvable:$true] %s293_s10 }
  0x15   : > { %p2200_p13 = pnand %p1885_p10, %p2174_p5  ;;  %p1772_p0 = scmp.ge.s32.totalorder %s2085_s30, 1 }
  0x16   : > { %p308_p1 = scmp.lt.s32.totalorder %s2085_s30, 3  ;;  %s282_s13 = scalar_lea.sflag [#allocation3], %s281_s19 }
  0x17   : > { %s1957_s14 = sshra.s32 %s292_s25, 4  ;;  %p1961_p3 = pneg %p2200_p13  ;;  %s1958_s14 = int_to_ptr.hbm [resolvable:$true] %s1957_s14 }
  0x18   : > { %s1959_s29 = scalar_lea.hbm %s1958_s14, 1024  ;;  %s1964_s15 = scalar_lea.hbm %s2805_s1, 2048 }
  0x19   : > { %p1960_p2 = scmp.ne.s32.totalorder %s1958_s14, %s1959_s29  ;;  %p1965_p5 = scmp.lt.s32.totalorder %s1958_s14, %s2805_s1 }
  0x1a   : > { %p1966_p8 = scmp.lt.s32.totalorder %s1964_s15, %s1959_s29 }
  0x1b   : > { %p1962_p4 = pnand %p1961_p3, %p1960_p2 }
  0x1c   : > { %p1967_p10 = por %p1966_p8, %p1965_p5 }
  0x1d   : > { %p1963_p7 = pneg %p1962_p4 }
  0x1f   : > { %p1968_p9 = pnand %p1967_p10, %p1963_p7 }
  0x21   : > { %1971 = shalt.err (!%p1968_p9)
}
  0x22   : > { %s2087_s19 = smov 128   ;;  %s2088_s24 = smov 8  }
  0x23   : > { %1877 = dma.hbm_to_vmem [thread:$0]  (!%p2200_p13), %s292_s25, 16384, %s294_s10, %s282_s13, %s2087_s19, %s2087_s19, %s2088_s24  }
  0x24   : > { %p309_p2 = pnand %p1772_p0, %p308_p1 }
  0x26   : > { %312 = sbr.rel (%p309_p2) target bundleno = 976 (0x3d0), region = 44 }
  0x2b   : > { %s2221_s26 = sand.u32 1, %s2077_s28  }
  0x2c   : > { %s1773_s29 = sshll.u32 %s2221_s26, 10  ;;  %s315_s14 = scalar_lea.sflag [#allocation3], %s2221_s26 }
  0x2d   : > { %s2225_s20 = scalar_lea.vmem [#allocation2], %s1773_s29 }
  0x2e   : > { %2060 = dma.done.wait (%p2178_p6), %s315_s14, 16384  }
  0x2f   : > { %2062 = vsyncadd (%p2178_p6), %s315_s14, 4294950912  ;;  %v417_v0 = vld [vmem:[%s2225_s20 + $0xf0] sm:$0xff]  ;;  %v418_v1 = vld [vmem:[%s2225_s20 + $0xf8] sm:$0xff]  ;;  %p370_p6 = scmp.lt.s32.totalorder %s2156_s9, 1  ;;  %s2837_s10 = sshll.u32 %s2221_s26, 3  ;;  %vm1407_vm9 = vcmask 64512  }
  0x30   : > { %v433_v2 = vld [vmem:[%s2225_s20 + $0x170] sm:$0xff]  ;;  %v545_v3 = vpack.c.bf16 %v417_v0, %v417_v0  ;;  %v546_v4 = vpack.c.bf16 %v418_v1, %v418_v1  ;;  %v434_v5 = vld [vmem:[%s2225_s20 + $0x178] sm:$0xff]  ;;  %v415_v14 = vld [vmem:[%s2225_s20 + $0xe0] sm:$0xff]  ;;  %s369_s12 = scalar_lea.vmem [#allocation6], %s2837_s10  ;;  %s1582_s24 = scalar_lea.sflag [#allocation7], %s2221_s26 }
  0x31   : > { %v561_v6 = vpack.c.bf16 %v433_v2, %v433_v2  ;;  %v449_v7 = vld [vmem:[%s2225_s20 + $0x1f0] sm:$0xff]  ;;  %v450_v8 = vld [vmem:[%s2225_s20 + $0x1f8] sm:$0xff]  ;;  %v562_v9 = vpack.c.bf16 %v434_v5, %v434_v5  ;;  %v416_v19 = vld [vmem:[%s2225_s20 + $0xe8] sm:$0xff]  ;;  %v543_v29 = vpack.c.bf16 %v415_v14, %v415_v14  ;;  %s2387_s16 = scalar_select %p370_p6, %s2156_s9, 1 }
  0x32   : > { %v577_v10 = vpack.c.bf16 %v449_v7, %v449_v7  ;;  %v578_v11 = vpack.c.bf16 %v450_v8, %v450_v8  ;;  %v401_v12 = vld [vmem:[%s2225_s20 + $0x70] sm:$0xff]  ;;  %v402_v13 = vld [vmem:[%s2225_s20 + $0x78] sm:$0xff]  ;;  %v821_v15 = vunpack.c.l.b16 %v545_v3  ;;  %v822_v16 = vunpack.c.l.b16 %v546_v4  ;;  %v431_v20 = vld [vmem:[%s2225_s20 + $0x160] sm:$0xff] }
  0x33   : > { %v837_v17 = vunpack.c.l.b16 %v561_v6  ;;  %v529_v18 = vpack.c.bf16 %v401_v12, %v401_v12  ;;  %v838_v21 = vunpack.c.l.b16 %v562_v9  ;;  %v530_v24 = vpack.c.bf16 %v402_v13, %v402_v13  ;;  %v432_v25 = vld [vmem:[%s2225_s20 + $0x168] sm:$0xff]  ;;  %v447_v26 = vld [vmem:[%s2225_s20 + $0x1e0] sm:$0xff]  ;;  %v413_v42 = vld [vmem:[%s2225_s20 + $0xd0] sm:$0xff]  ;;  %s1776_s25 = sshll.u32 %s2387_s16, 3  ;;  %s1851_s23 = sshll.u32 %s2387_s16, 5 }
  0x34   : > { %v853_v22 = vunpack.c.l.b16 %v577_v10  ;;  %v854_v23 = vunpack.c.l.b16 %v578_v11  ;;  %v2244_v27 = vpack.c.b16 %v822_v16, %v821_v15  ;;  %v544_v30 = vpack.c.bf16 %v416_v19, %v416_v19  ;;  %v448_v31 = vld [vmem:[%s2225_s20 + $0x1e8] sm:$0xff]  ;;  %v399_v32 = vld [vmem:[%s2225_s20 + $0x60] sm:$0xff]  ;;  %v414_v43 = vld [vmem:[%s2225_s20 + $0xd8] sm:$0xff]  ;;  %s373_s13 = scalar_lea.vmem %s2804_s0, %s1776_s25  ;;  %s377_s22 = scalar_lea.vmem %s2806_s2, %s1776_s25 }
  0x35   : > { %v805_v28 = vunpack.c.l.b16 %v529_v18  ;;  %v2248_v33 = vpack.c.b16 %v838_v21, %v837_v17  ;;  %v806_v35 = vunpack.c.l.b16 %v530_v24  ;;  %v559_v36 = vpack.c.bf16 %v431_v20, %v431_v20  ;;  %v400_v37 = vld [vmem:[%s2225_s20 + $0x68] sm:$0xff]  ;;  %v429_v48 = vld [vmem:[%s2225_s20 + $0x150] sm:$0xff]  ;;  %v430_v49 = vld [vmem:[%s2225_s20 + $0x158] sm:$0xff]  ;;  %s2650_s29 = scalar_lea.vmem %s2811_s7, %s1851_s23  ;;  %s1611_s23 = sshll.u32 %s369_s12, 4  ;;  %s1612_s23 = int_to_ptr.vmem [resolvable:$true] %s1611_s23 }
  0x36   : > { %v2250_v34 = vpack.c.b16 %v854_v23, %v853_v22  ;;  %1060 = vmatpush.bf16.xpose.msra.mxu1 %v2244_v27  ;;  %v819_v38 = vunpack.c.l.b16 %v543_v29  ;;  %v820_v39 = vunpack.c.l.b16 %v544_v30  ;;  %v560_v40 = vpack.c.bf16 %v432_v25, %v432_v25  ;;  %v445_v53 = vld [vmem:[%s2225_s20 + $0x1d0] sm:$0xff]  ;;  %v446_v58 = vld [vmem:[%s2225_s20 + $0x1d8] sm:$0xff]  ;;  %v411_v12 = vld [vmem:[%s2225_s20 + $0xc0] sm:$0xff] }
  0x37   : > { %v575_v41 = vpack.c.bf16 %v447_v26, %v447_v26  ;;  %1073 = vmatpush.bf16.xpose.msra.mxu2 %v2248_v33  ;;  %v2258_v44 = vpack.c.b16 %v806_v35, %v805_v28  ;;  %v835_v45 = vunpack.c.l.b16 %v559_v36  ;;  %v576_v46 = vpack.c.bf16 %v448_v31, %v448_v31  ;;  %v397_v63 = vld [vmem:[%s2225_s20 + $0x50] sm:$0xff]  ;;  %v398_v0 = vld [vmem:[%s2225_s20 + $0x58] sm:$0xff]  ;;  %v412_v15 = vld [vmem:[%s2225_s20 + $0xc8] sm:$0xff] }
  0x38   : > { %1086 = vmatpush.bf16.xpose.msra.mxu3 %v2250_v34  ;;  %v527_v47 = vpack.c.bf16 %v399_v32, %v399_v32  ;;  %v836_v50 = vunpack.c.l.b16 %v560_v40  ;;  %v528_v52 = vpack.c.bf16 %v400_v37, %v400_v37  ;;  %v541_v56 = vpack.c.bf16 %v413_v42, %v413_v42  ;;  %v427_v16 = vld [vmem:[%s2225_s20 + $0x140] sm:$0xff]  ;;  %v428_v17 = vld [vmem:[%s2225_s20 + $0x148] sm:$0xff]  ;;  %v410_v42 = vld [vmem:[%s2225_s20 + $0xb8] sm:$0xff] }
  0x39   : > { %v851_v51 = vunpack.c.l.b16 %v575_v41  ;;  %1047 = vmatpush.bf16.xpose.msra.mxu0 %v2258_v44  ;;  %v852_v54 = vunpack.c.l.b16 %v576_v46  ;;  %v542_v57 = vpack.c.bf16 %v414_v43, %v414_v43  ;;  %v2265_v59 = vpack.c.b16 %v820_v39, %v819_v38  ;;  %v443_v18 = vld [vmem:[%s2225_s20 + $0x1c0] sm:$0xff]  ;;  %v444_v19 = vld [vmem:[%s2225_s20 + $0x1c8] sm:$0xff]  ;;  %v409_v39 = vld [vmem:[%s2225_s20 + $0xb0] sm:$0xff] }
  0x3a   : > { %v803_v55 = vunpack.c.l.b16 %v527_v47  ;;  %v804_v60 = vunpack.c.l.b16 %v528_v52  ;;  %v557_v61 = vpack.c.bf16 %v429_v48, %v429_v48  ;;  %v558_v62 = vpack.c.bf16 %v430_v49, %v430_v49  ;;  %v395_v28 = vld [vmem:[%s2225_s20 + $0x40] sm:$0xff]  ;;  %v396_v29 = vld [vmem:[%s2225_s20 + $0x48] sm:$0xff]  ;;  %v425_v48 = vld [vmem:[%s2225_s20 + $0x130] sm:$0xff] }
  0x3b   : > { %v2269_v1 = vpack.c.b16 %v836_v50, %v835_v45  ;;  %v2271_v2 = vpack.c.b16 %v852_v54, %v851_v51  ;;  %v573_v3 = vpack.c.bf16 %v445_v53, %v445_v53  ;;  %v817_v4 = vunpack.c.l.b16 %v541_v56  ;;  %v426_v49 = vld [vmem:[%s2225_s20 + $0x138] sm:$0xff]  ;;  %v441_v51 = vld [vmem:[%s2225_s20 + $0x1b0] sm:$0xff] }
  0x3c   : > { %v574_v5 = vpack.c.bf16 %v446_v58, %v446_v58  ;;  %v2273_v6 = vpack.c.b16 %v804_v60, %v803_v55  ;;  %v818_v7 = vunpack.c.l.b16 %v542_v57  ;;  %v525_v8 = vpack.c.bf16 %v397_v63, %v397_v63  ;;  %v442_v52 = vld [vmem:[%s2225_s20 + $0x1b8] sm:$0xff]  ;;  %v393_v60 = vld [vmem:[%s2225_s20 + $0x30] sm:$0xff] }
  0x3d   : > { %v526_v9 = vpack.c.bf16 %v398_v0, %v398_v0  ;;  %v833_v10 = vunpack.c.l.b16 %v557_v61  ;;  %v834_v11 = vunpack.c.l.b16 %v558_v62  ;;  %v849_v13 = vunpack.c.l.b16 %v573_v3  ;;  %v394_v61 = vld [vmem:[%s2225_s20 + $0x38] sm:$0xff] }
  0x3e   : > { %1061 = vmatpush.bf16.xpose.msra.mxu1 %v2265_v59  ;;  %v850_v14 = vunpack.c.l.b16 %v574_v5  ;;  %v2285_v20 = vpack.c.b16 %v818_v7, %v817_v4  ;;  %v801_v21 = vunpack.c.l.b16 %v525_v8  ;;  %v539_v24 = vpack.c.bf16 %v411_v12, %v411_v12 }
  0x3f   : > { %1074 = vmatpush.bf16.xpose.msra.mxu2 %v2269_v1  ;;  %v802_v22 = vunpack.c.l.b16 %v526_v9  ;;  %v2287_v23 = vpack.c.b16 %v834_v11, %v833_v10  ;;  %v540_v25 = vpack.c.bf16 %v412_v15, %v412_v15  ;;  %v555_v26 = vpack.c.bf16 %v427_v16, %v427_v16  ;;  %v408_v15 = vld [vmem:[%s2225_s20 + $0xa8] sm:$0xff]  ;;  %v423_v16 = vld [vmem:[%s2225_s20 + $0x120] sm:$0xff] }
  0x40   : > { %1087 = vmatpush.bf16.xpose.msra.mxu3 %v2271_v2  ;;  %v2291_v30 = vpack.c.b16 %v850_v14, %v849_v13  ;;  %v556_v31 = vpack.c.bf16 %v428_v17, %v428_v17  ;;  %v571_v32 = vpack.c.bf16 %v443_v18, %v443_v18  ;;  %v572_v35 = vpack.c.bf16 %v444_v19, %v444_v19  ;;  %v407_v14 = vld [vmem:[%s2225_s20 + $0xa0] sm:$0xff]  ;;  %v424_v17 = vld [vmem:[%s2225_s20 + $0x128] sm:$0xff] }
  0x41   : > { %1048 = vmatpush.bf16.xpose.msra.mxu0 %v2273_v6  ;;  %v2293_v36 = vpack.c.b16 %v802_v22, %v801_v21  ;;  %v523_v37 = vpack.c.bf16 %v395_v28, %v395_v28  ;;  %v524_v38 = vpack.c.bf16 %v396_v29, %v396_v29  ;;  %v815_v40 = vunpack.c.l.b16 %v539_v24  ;;  %v439_v18 = vld [vmem:[%s2225_s20 + $0x1a0] sm:$0xff]  ;;  %v440_v19 = vld [vmem:[%s2225_s20 + $0x1a8] sm:$0xff] }
  0x42   : > { %v816_v41 = vunpack.c.l.b16 %v540_v25  ;;  %v831_v43 = vunpack.c.l.b16 %v555_v26  ;;  %v832_v45 = vunpack.c.l.b16 %v556_v31  ;;  %v847_v46 = vunpack.c.l.b16 %v571_v32  ;;  %v391_v31 = vld [vmem:[%s2225_s20 + $0x20] sm:$0xff]  ;;  %v392_v32 = vld [vmem:[%s2225_s20 + $0x28] sm:$0xff] }
  0x43   : > { %v848_v47 = vunpack.c.l.b16 %v572_v35  ;;  %v537_v50 = vpack.c.bf16 %v409_v39, %v409_v39  ;;  %v799_v53 = vunpack.c.l.b16 %v523_v37  ;;  %v800_v54 = vunpack.c.l.b16 %v524_v38 }
  0x44   : > { %v538_v55 = vpack.c.bf16 %v410_v42, %v410_v42  ;;  %v2305_v56 = vpack.c.b16 %v816_v41, %v815_v40  ;;  %v553_v57 = vpack.c.bf16 %v425_v48, %v425_v48  ;;  %v554_v58 = vpack.c.bf16 %v426_v49, %v426_v49  ;;  %v421_v48 = vld [vmem:[%s2225_s20 + $0x110] sm:$0xff]  ;;  %v422_v49 = vld [vmem:[%s2225_s20 + $0x118] sm:$0xff] }
  0x45   : > { %v2309_v62 = vpack.c.b16 %v832_v45, %v831_v43  ;;  %v2311_v63 = vpack.c.b16 %v848_v47, %v847_v46  ;;  %v569_v0 = vpack.c.bf16 %v441_v51, %v441_v51  ;;  %v570_v3 = vpack.c.bf16 %v442_v52, %v442_v52  ;;  %v405_v43 = vld [vmem:[%s2225_s20 + $0x90] sm:$0xff]  ;;  %v406_v45 = vld [vmem:[%s2225_s20 + $0x98] sm:$0xff] }
  0x46   : > { %1062 = vmatpush.bf16.xpose.msra.mxu1 %v2285_v20  ;;  %v813_v4 = vunpack.c.l.b16 %v537_v50  ;;  %v2313_v5 = vpack.c.b16 %v800_v54, %v799_v53  ;;  %v814_v7 = vunpack.c.l.b16 %v538_v55  ;;  %v521_v8 = vpack.c.bf16 %v393_v60, %v393_v60  ;;  %v437_v54 = vld [vmem:[%s2225_s20 + $0x190] sm:$0xff]  ;;  %v438_v55 = vld [vmem:[%s2225_s20 + $0x198] sm:$0xff] }
  0x47   : > { %1075 = vmatpush.bf16.xpose.msra.mxu2 %v2287_v23  ;;  %v522_v9 = vpack.c.bf16 %v394_v61, %v394_v61  ;;  %v829_v10 = vunpack.c.l.b16 %v553_v57  ;;  %v830_v11 = vunpack.c.l.b16 %v554_v58  ;;  %v845_v12 = vunpack.c.l.b16 %v569_v0 }
  0x48   : > { %1088 = vmatpush.bf16.xpose.msra.mxu3 %v2291_v30  ;;  %v846_v13 = vunpack.c.l.b16 %v570_v3  ;;  %v2325_v21 = vpack.c.b16 %v814_v7, %v813_v4  ;;  %v797_v22 = vunpack.c.l.b16 %v521_v8  ;;  %v535_v26 = vpack.c.bf16 %v407_v14, %v407_v14  ;;  %v389_v4 = vld [vmem:[%s2225_s20 + $0x10] sm:$0xff]  ;;  %v390_v7 = vld [vmem:[%s2225_s20 + $0x18] sm:$0xff] }
  0x49   : > { %1049 = vmatpush.bf16.xpose.msra.mxu0 %v2293_v36  ;;  %v798_v24 = vunpack.c.l.b16 %v522_v9  ;;  %v2327_v25 = vpack.c.b16 %v830_v11, %v829_v10  ;;  %v536_v28 = vpack.c.bf16 %v408_v15, %v408_v15  ;;  %v551_v29 = vpack.c.bf16 %v423_v16, %v423_v16 }
  0x4a   : > { %v2331_v35 = vpack.c.b16 %v846_v13, %v845_v12  ;;  %v552_v37 = vpack.c.bf16 %v424_v17, %v424_v17  ;;  %v567_v38 = vpack.c.bf16 %v439_v18, %v439_v18  ;;  %v568_v39 = vpack.c.bf16 %v440_v19, %v440_v19  ;;  %v403_v13 = vld [vmem:[%s2225_s20 + $0x80] sm:$0xff]  ;;  %v404_v17 = vld [vmem:[%s2225_s20 + $0x88] sm:$0xff] }
  0x4b   : > { %v2333_v40 = vpack.c.b16 %v798_v24, %v797_v22  ;;  %v519_v41 = vpack.c.bf16 %v391_v31, %v391_v31  ;;  %v520_v42 = vpack.c.bf16 %v392_v32, %v392_v32  ;;  %v811_v46 = vunpack.c.l.b16 %v535_v26  ;;  %v419_v26 = vld [vmem:[%s2225_s20 + $0x100] sm:$0xff] }
  0x4c   : > { %v812_v47 = vunpack.c.l.b16 %v536_v28  ;;  %v827_v50 = vunpack.c.l.b16 %v551_v29  ;;  %v828_v51 = vunpack.c.l.b16 %v552_v37  ;;  %v843_v52 = vunpack.c.l.b16 %v567_v38  ;;  %v420_v28 = vld [vmem:[%s2225_s20 + $0x108] sm:$0xff]  ;;  %v435_v38 = vld [vmem:[%s2225_s20 + $0x180] sm:$0xff] }
  0x4d   : > { %v844_v53 = vunpack.c.l.b16 %v568_v39  ;;  %v533_v57 = vpack.c.bf16 %v405_v43, %v405_v43  ;;  %v534_v58 = vpack.c.bf16 %v406_v45, %v406_v45  ;;  %v795_v60 = vunpack.c.l.b16 %v519_v41  ;;  %v436_v39 = vld [vmem:[%s2225_s20 + $0x188] sm:$0xff]  ;;  %v481_v41 = vld [vmem:[%s2225_s20 + $0x2f0] sm:$0xff] }
  0x4e   : > { %1063 = vmatpush.bf16.xpose.msra.mxu1 %v2305_v56  ;;  %v796_v61 = vunpack.c.l.b16 %v520_v42  ;;  %v549_v0 = vpack.c.bf16 %v421_v48, %v421_v48  ;;  %v550_v3 = vpack.c.bf16 %v422_v49, %v422_v49  ;;  %v2347_v8 = vpack.c.b16 %v812_v47, %v811_v46  ;;  %v482_v47 = vld [vmem:[%s2225_s20 + $0x2f8] sm:$0xff]  ;;  %v497_v48 = vld [vmem:[%s2225_s20 + $0x370] sm:$0xff] }
  0x4f   : > { %1076 = vmatpush.bf16.xpose.msra.mxu2 %v2309_v62  ;;  %v565_v9 = vpack.c.bf16 %v437_v54, %v437_v54  ;;  %v566_v10 = vpack.c.bf16 %v438_v55, %v438_v55  ;;  %v2349_v11 = vpack.c.b16 %v828_v51, %v827_v50  ;;  %v2351_v12 = vpack.c.b16 %v844_v53, %v843_v52  ;;  %v498_v49 = vld [vmem:[%s2225_s20 + $0x378] sm:$0xff]  ;;  %v513_v52 = vld [vmem:[%s2225_s20 + $0x3f0] sm:$0xff] }
  0x50   : > { %1089 = vmatpush.bf16.xpose.msra.mxu3 %v2311_v63  ;;  %v809_v14 = vunpack.c.l.b16 %v533_v57  ;;  %v517_v15 = vpack.c.bf16 %v389_v4, %v389_v4  ;;  %v518_v16 = vpack.c.bf16 %v390_v7, %v390_v7  ;;  %v2355_v18 = vpack.c.b16 %v796_v61, %v795_v60  ;;  %v387_v60 = vld [vmem:[%s2225_s20] sm:$0xff]  ;;  %v388_v61 = vld [vmem:[%s2225_s20 + $0x8] sm:$0xff] }
  0x51   : > { %1050 = vmatpush.bf16.xpose.msra.mxu0 %v2313_v5  ;;  %v810_v19 = vunpack.c.l.b16 %v534_v58  ;;  %v825_v22 = vunpack.c.l.b16 %v549_v0  ;;  %v826_v24 = vunpack.c.l.b16 %v550_v3  ;;  %v841_v29 = vunpack.c.l.b16 %v565_v9  ;;  %v514_v58 = vld [vmem:[%s2225_s20 + $0x3f8] sm:$0xff]  ;;  %v465_v9 = vld [vmem:[%s2225_s20 + $0x270] sm:$0xff] }
  0x52   : > { %v842_v31 = vunpack.c.l.b16 %v566_v10  ;;  %v531_v32 = vpack.c.bf16 %v403_v13, %v403_v13  ;;  %v532_v37 = vpack.c.bf16 %v404_v17, %v404_v17  ;;  %v793_v42 = vunpack.c.l.b16 %v517_v15  ;;  %v466_v10 = vld [vmem:[%s2225_s20 + $0x278] sm:$0xff] }
  0x53   : > { %v794_v43 = vunpack.c.l.b16 %v518_v16  ;;  %v547_v45 = vpack.c.bf16 %v419_v26, %v419_v26  ;;  %v548_v46 = vpack.c.bf16 %v420_v28, %v420_v28  ;;  %v2369_v50 = vpack.c.b16 %v810_v19, %v809_v14 }
  0x54   : > { %v2371_v51 = vpack.c.b16 %v826_v24, %v825_v22  ;;  %v2375_v53 = vpack.c.b16 %v842_v31, %v841_v29  ;;  %v807_v54 = vunpack.c.l.b16 %v531_v32  ;;  %v563_v55 = vpack.c.bf16 %v435_v38, %v435_v38 }
  0x55   : > { %v564_v57 = vpack.c.bf16 %v436_v39, %v436_v39  ;;  %v609_v0 = vpack.c.bf16 %v481_v41, %v481_v41  ;;  %v610_v3 = vpack.c.bf16 %v482_v47, %v482_v47  ;;  %v625_v4 = vpack.c.bf16 %v497_v48, %v497_v48  ;;  %v479_v41 = vld [vmem:[%s2225_s20 + $0x2e0] sm:$0xff]  ;;  %v480_v47 = vld [vmem:[%s2225_s20 + $0x2e8] sm:$0xff] }
  0x56   : > { %1064 = vmatpush.bf16.xpose.msra.mxu1 %v2325_v21  ;;  %v626_v7 = vpack.c.bf16 %v498_v49, %v498_v49  ;;  %v2382_v13 = vpack.c.b16 %v794_v43, %v793_v42  ;;  %v808_v14 = vunpack.c.l.b16 %v532_v37  ;;  %v823_v15 = vunpack.c.l.b16 %v547_v45  ;;  %v495_v48 = vld [vmem:[%s2225_s20 + $0x360] sm:$0xff]  ;;  %v496_v49 = vld [vmem:[%s2225_s20 + $0x368] sm:$0xff] }
  0x57   : > { %1077 = vmatpush.bf16.xpose.msra.mxu2 %v2327_v25  ;;  %v824_v16 = vunpack.c.l.b16 %v548_v46  ;;  %v641_v17 = vpack.c.bf16 %v513_v52, %v513_v52  ;;  %v642_v19 = vpack.c.bf16 %v514_v58, %v514_v58  ;;  %v515_v22 = vpack.c.bf16 %v387_v60, %v387_v60  ;;  %v511_v58 = vld [vmem:[%s2225_s20 + $0x3e0] sm:$0xff]  ;;  %v512_v60 = vld [vmem:[%s2225_s20 + $0x3e8] sm:$0xff] }
  0x58   : > { %1090 = vmatpush.bf16.xpose.msra.mxu3 %v2331_v35  ;;  %v516_v24 = vpack.c.bf16 %v388_v61, %v388_v61  ;;  %v839_v26 = vunpack.c.l.b16 %v563_v55  ;;  %v840_v28 = vunpack.c.l.b16 %v564_v57  ;;  %v593_v29 = vpack.c.bf16 %v465_v9, %v465_v9  ;;  %v464_v9 = vld [vmem:[%s2225_s20 + $0x268] sm:$0xff] }
  0x59   : > { %1051 = vmatpush.bf16.xpose.msra.mxu0 %v2333_v40  ;;  %v594_v31 = vpack.c.bf16 %v466_v10, %v466_v10  ;;  %v885_v32 = vunpack.c.l.b16 %v609_v0  ;;  %v886_v37 = vunpack.c.l.b16 %v610_v3  ;;  %v901_v38 = vunpack.c.l.b16 %v625_v4 }
  0x5a   : > { %v902_v39 = vunpack.c.l.b16 %v626_v7  ;;  %v917_v42 = vunpack.c.l.b16 %v641_v17  ;;  %v918_v43 = vunpack.c.l.b16 %v642_v19  ;;  %v791_v45 = vunpack.c.l.b16 %v515_v22  ;;  %v463_v7 = vld [vmem:[%s2225_s20 + $0x260] sm:$0xff] }
  0x5b   : > { %v792_v46 = vunpack.c.l.b16 %v516_v24  ;;  %v2398_v52 = vpack.c.b16 %v808_v14, %v807_v54  ;;  %v869_v55 = vunpack.c.l.b16 %v593_v29  ;;  %v870_v57 = vunpack.c.l.b16 %v594_v31  ;;  %v2426_v29 = vld [vmem:[%s373_s13] sm:$0xff]  ;;  %s1846_s13 = sshll.u32 %s2156_s9, 3  ;;  %s2007_s9 = scalar_lea.hbm %s2812_s8, 16 }
  0x5c   : > { %v2402_v61 = vpack.c.b16 %v824_v16, %v823_v15  ;;  %v2404_v0 = vpack.c.b16 %v840_v28, %v839_v26  ;;  %v2406_v3 = vpack.c.b16 %v886_v37, %v885_v32  ;;  %v2408_v4 = vpack.c.b16 %v902_v39, %v901_v38  ;;  %2847 = vst [vmem:[#allocation15_spill] sm:$0xff] %v2426_v29  ;;  %v477_v39 = vld [vmem:[%s2225_s20 + $0x2d0] sm:$0xff] }
  0x5d   : > { %2845 = vst [vmem:[#allocation13_spill] sm:$0xff] %v2398_v52  ;;  %v607_v54 = vpack.c.bf16 %v479_v41, %v479_v41  ;;  %v608_v10 = vpack.c.bf16 %v480_v47, %v480_v47  ;;  %v623_v14 = vpack.c.bf16 %v495_v48, %v495_v48  ;;  %v624_v17 = vpack.c.bf16 %v496_v49, %v496_v49  ;;  %v478_v41 = vld [vmem:[%s2225_s20 + $0x2d8] sm:$0xff] }
  0x5e   : > { %1065 = vmatpush.bf16.xpose.msra.mxu1 %v2347_v8  ;;  %2846 = vst [vmem:[#allocation14_spill] sm:$0xff] %v2406_v3  ;;  %v2417_v19 = vpack.c.b16 %v918_v43, %v917_v42  ;;  %v2419_v15 = vpack.c.b16 %v792_v46, %v791_v45  ;;  %v639_v16 = vpack.c.bf16 %v511_v58, %v511_v58  ;;  %v493_v45 = vld [vmem:[%s2225_s20 + $0x350] sm:$0xff]  ;;  %v494_v46 = vld [vmem:[%s2225_s20 + $0x358] sm:$0xff] }
  0x5f   : > { %1078 = vmatpush.bf16.xpose.msra.mxu2 %v2349_v11  ;;  %v640_v22 = vpack.c.bf16 %v512_v60, %v512_v60  ;;  %v2422_v24 = vpack.c.b16 %v870_v57, %v869_v55  ;;  %v591_v26 = vpack.c.bf16 %v463_v7, %v463_v7  ;;  %v592_v28 = vpack.c.bf16 %v464_v9, %v464_v9  ;;  %v509_v55 = vld [vmem:[%s2225_s20 + $0x3d0] sm:$0xff]  ;;  %v510_v57 = vld [vmem:[%s2225_s20 + $0x3d8] sm:$0xff] }
  0x60   : > { %1091 = vmatpush.bf16.xpose.msra.mxu3 %v2351_v12  ;;  %v883_v31 = vunpack.c.l.b16 %v607_v54  ;;  %v884_v32 = vunpack.c.l.b16 %v608_v10  ;;  %v899_v37 = vunpack.c.l.b16 %v623_v14  ;;  %v900_v38 = vunpack.c.l.b16 %v624_v17  ;;  %v461_v7 = vld [vmem:[%s2225_s20 + $0x250] sm:$0xff]  ;;  %v462_v9 = vld [vmem:[%s2225_s20 + $0x258] sm:$0xff] }
  0x61   : > { %1052 = vmatpush.bf16.xpose.msra.mxu0 %v2355_v18  ;;  %v915_v42 = vunpack.c.l.b16 %v639_v16  ;;  %v916_v43 = vunpack.c.l.b16 %v640_v22  ;;  %v2438_v47 = vpack.c.bf16 %v2426_v29, %v2426_v29  ;;  %v867_v48 = vunpack.c.l.b16 %v591_v26 }
  0x62   : > { %v868_v49 = vunpack.c.l.b16 %v592_v28  ;;  %v605_v58 = vpack.c.bf16 %v477_v39, %v477_v39  ;;  %v606_v60 = vpack.c.bf16 %v478_v41, %v478_v41  ;;  %v2445_v54 = vpack.c.b16 %v884_v32, %v883_v31  ;;  %v475_v41 = vld [vmem:[%s2225_s20 + $0x2c0] sm:$0xff] }
  0x63   : > { %v2447_v10 = vpack.c.b16 %v900_v38, %v899_v37  ;;  %v621_v14 = vpack.c.bf16 %v493_v45, %v493_v45  ;;  %v622_v17 = vpack.c.bf16 %v494_v46, %v494_v46  ;;  %v2449_v16 = vpack.c.b16 %v916_v43, %v915_v42  ;;  %v476_v45 = vld [vmem:[%s2225_s20 + $0x2c8] sm:$0xff]  ;;  %v491_v46 = vld [vmem:[%s2225_s20 + $0x340] sm:$0xff] }
  0x64   : > { %2848 = vst [vmem:[#allocation16_spill] sm:$0xff] %v2445_v54  ;;  %v637_v22 = vpack.c.bf16 %v509_v55, %v509_v55  ;;  %v638_v29 = vpack.c.bf16 %v510_v57, %v510_v57  ;;  %v2454_v26 = vpack.c.b16 %v868_v49, %v867_v48  ;;  %v589_v28 = vpack.c.bf16 %v461_v7, %v461_v7  ;;  %v492_v48 = vld [vmem:[%s2225_s20 + $0x348] sm:$0xff]  ;;  %v507_v57 = vld [vmem:[%s2225_s20 + $0x3c0] sm:$0xff] }
  0x65   : > { %2849 = vst [vmem:[#allocation17_spill] sm:$0xff] %v2447_v10  ;;  %v590_v31 = vpack.c.bf16 %v462_v9, %v462_v9  ;;  %v881_v32 = vunpack.c.l.b16 %v605_v58  ;;  %v882_v37 = vunpack.c.l.b16 %v606_v60  ;;  %v897_v38 = vunpack.c.l.b16 %v621_v14  ;;  %v508_v58 = vld [vmem:[%s2225_s20 + $0x3c8] sm:$0xff]  ;;  %v459_v9 = vld [vmem:[%s2225_s20 + $0x240] sm:$0xff] }
  0x66   : > { %1066 = vmatpush.bf16.xpose.msra.mxu1 %v2369_v50  ;;  %2850 = vst [vmem:[#allocation18_spill] sm:$0xff] %v2449_v16  ;;  %v898_v39 = vunpack.c.l.b16 %v622_v17  ;;  %v913_v42 = vunpack.c.l.b16 %v637_v22  ;;  %v914_v43 = vunpack.c.l.b16 %v638_v29  ;;  %v865_v49 = vunpack.c.l.b16 %v589_v28  ;;  %v460_v14 = vld [vmem:[%s2225_s20 + $0x248] sm:$0xff] }
  0x67   : > { %1079 = vmatpush.bf16.xpose.msra.mxu2 %v2371_v51  ;;  %2851 = vst [vmem:[#allocation19_spill] sm:$0xff] %v2454_v26  ;;  %v866_v55 = vunpack.c.l.b16 %v590_v31  ;;  %v2467_v60 = vpack.c.b16 %v882_v37, %v881_v32  ;;  %v603_v7 = vpack.c.bf16 %v475_v41, %v475_v41  ;;  %v604_v29 = vpack.c.bf16 %v476_v45, %v476_v45  ;;  %v473_v37 = vld [vmem:[%s2225_s20 + $0x2b0] sm:$0xff] }
  0x68   : > { %1092 = vmatpush.bf16.xpose.msra.mxu3 %v2375_v53  ;;  %v2471_v17 = vpack.c.b16 %v898_v39, %v897_v38  ;;  %v619_v22 = vpack.c.bf16 %v491_v46, %v491_v46  ;;  %v635_v28 = vpack.c.bf16 %v507_v57, %v507_v57  ;;  %v636_v31 = vpack.c.bf16 %v508_v58, %v508_v58  ;;  %v490_v46 = vld [vmem:[%s2225_s20 + $0x338] sm:$0xff]  ;;  %v505_v58 = vld [vmem:[%s2225_s20 + $0x3b0] sm:$0xff] }
  0x69   : > { %1053 = vmatpush.bf16.xpose.msra.mxu0 %v2382_v13  ;;  %2852 = vst [vmem:[#allocation20_spill] sm:$0xff] %v2467_v60  ;;  %v588_v32 = vpack.c.bf16 %v460_v14, %v460_v14  ;;  %v879_v38 = vunpack.c.l.b16 %v603_v7  ;;  %v880_v39 = vunpack.c.l.b16 %v604_v29  ;;  %v601_v14 = vpack.c.bf16 %v473_v37, %v473_v37 }
  0x6a   : > { %2853 = vst [vmem:[#allocation21_spill] sm:$0xff] %v2471_v17  ;;  %v895_v41 = vunpack.c.l.b16 %v619_v22  ;;  %v618_v22 = vpack.c.bf16 %v490_v46, %v490_v46 }
  0x6b   : > { %v864_v57 = vunpack.c.l.b16 %v588_v32 }
  0x6e   : > { %1067 = vmatpush.bf16.xpose.msra.mxu1 %v2398_v52 }
  0x6f   : > { %1080 = vmatpush.bf16.xpose.msra.mxu2 %v2402_v61 }
  0x70   : > { %1093 = vmatpush.bf16.xpose.msra.mxu3 %v2404_v0 }
  0x71   : > { %1054 = vmatpush.bf16.xpose.msra.mxu0 %v2419_v15 }
  0x75   : > { %1068 = vmatmul.bf16.vlgmr.msra.gmra.mxu1 %v2438_v47 }
  0x76   : > { %1112 = vmatpush.bf16.xpose.msrb.mxu1 %v2406_v3  ;;  %1081 = vmatmul.bf16.vlgmr.msra.gmra.mxu2 %v2438_v47  ;;  %v2473_v3 = vpack.c.b16 %v914_v43, %v913_v42  ;;  %v474_v42 = vld [vmem:[%s2225_s20 + $0x2b8] sm:$0xff]  ;;  %v489_v43 = vld [vmem:[%s2225_s20 + $0x330] sm:$0xff] }
  0x77   : > { %1125 = vmatpush.bf16.xpose.msrb.mxu2 %v2408_v4  ;;  %1094 = vmatmul.bf16.vlgmr.msra.gmra.mxu3 %v2438_v47  ;;  %v602_v7 = vpack.c.bf16 %v474_v42, %v474_v42  ;;  %v617_v29 = vpack.c.bf16 %v489_v43, %v489_v43  ;;  %v877_v42 = vunpack.c.l.b16 %v601_v14 }
  0x78   : > { %1138 = vmatpush.bf16.xpose.msrb.mxu3 %v2417_v19  ;;  %1055 = vmatmul.bf16.vlgmr.msra.gmra.mxu0 %v2438_v47  ;;  %2854 = vst [vmem:[#allocation22_spill] sm:$0xff] %v2473_v3 }
  0x79   : > { %1099 = vmatpush.bf16.xpose.msrb.mxu0 %v2422_v24  ;;  %v878_v43 = vunpack.c.l.b16 %v602_v7  ;;  %v893_v46 = vunpack.c.l.b16 %v617_v29  ;;  %v455_v29 = vld [vmem:[%s2225_s20 + $0x220] sm:$0xff] }
  0x7b   : > { %v2507_v14 = vpack.c.b16 %v878_v43, %v877_v42  ;;  %v469_v43 = vld [vmem:[%s2225_s20 + $0x290] sm:$0xff] }
  0x7d   : > { %2860 = vst [vmem:[#allocation28_spill] sm:$0xff] %v2507_v14 }
  0x7e   : > { %1113 = vmatpush.bf16.xpose.msrb.mxu1 %v2445_v54  ;;  %v620_v54 = vpack.c.bf16 %v492_v48, %v492_v48  ;;  %v911_v48 = vunpack.c.l.b16 %v635_v28  ;;  %v633_v28 = vpack.c.bf16 %v505_v58, %v505_v58  ;;  %v503_v58 = vld [vmem:[%s2225_s20 + $0x3a0] sm:$0xff] }
  0x7f   : > { %1126 = vmatpush.bf16.xpose.msrb.mxu2 %v2447_v10 }
  0x80   : > { %1139 = vmatpush.bf16.xpose.msrb.mxu3 %v2449_v16  ;;  %v587_v16 = vpack.c.bf16 %v459_v9, %v459_v9  ;;  %v896_v45 = vunpack.c.l.b16 %v620_v54  ;;  %v506_v9 = vld [vmem:[%s2225_s20 + $0x3b8] sm:$0xff]  ;;  %v457_v54 = vld [vmem:[%s2225_s20 + $0x230] sm:$0xff] }
  0x81   : > { %1100 = vmatpush.bf16.xpose.msrb.mxu0 %v2454_v26  ;;  %v2475_v26 = vpack.c.b16 %v866_v55, %v865_v49  ;;  %v912_v49 = vunpack.c.l.b16 %v636_v31  ;;  %v585_v32 = vpack.c.bf16 %v457_v54, %v457_v54 }
  0x82   : > { %v863_v55 = vunpack.c.l.b16 %v587_v16  ;;  %v2491_v10 = vpack.c.b16 %v896_v45, %v895_v41  ;;  %v634_v16 = vpack.c.bf16 %v506_v9, %v506_v9  ;;  %v909_v41 = vunpack.c.l.b16 %v633_v28  ;;  %v504_v9 = vld [vmem:[%s2225_s20 + $0x3a8] sm:$0xff] }
  0x83   : > { %2855 = vst [vmem:[#allocation23_spill] sm:$0xff] %v2475_v26 }
  0x84   : > { %2857 = vst [vmem:[#allocation25_spill] sm:$0xff] %v2491_v10  ;;  %v2495_v31 = vpack.c.b16 %v864_v57, %v863_v55  ;;  %v910_v45 = vunpack.c.l.b16 %v634_v16  ;;  %v861_v55 = vunpack.c.l.b16 %v585_v32  ;;  %v631_v32 = vpack.c.bf16 %v503_v58, %v503_v58 }
  0x86   : > { %1114 = vmatpush.bf16.xpose.msrb.mxu1 %v2467_v60  ;;  %v458_v60 = vld [vmem:[%s2225_s20 + $0x238] sm:$0xff]  ;;  %2859 = vst [vmem:[#allocation27_spill] sm:$0xff] %v2495_v31 }
  0x87   : > { %1127 = vmatpush.bf16.xpose.msrb.mxu2 %v2471_v17  ;;  %v2489_v17 = vpack.c.b16 %v880_v39, %v879_v38  ;;  %v586_v37 = vpack.c.bf16 %v458_v60, %v458_v60  ;;  %v894_v38 = vunpack.c.l.b16 %v618_v22  ;;  %v471_v39 = vld [vmem:[%s2225_s20 + $0x2a0] sm:$0xff]  ;;  %v488_v60 = vld [vmem:[%s2225_s20 + $0x328] sm:$0xff] }
  0x88   : > { %1140 = vmatpush.bf16.xpose.msrb.mxu3 %v2473_v3  ;;  %v2493_v3 = vpack.c.b16 %v912_v49, %v911_v48  ;;  %v472_v48 = vld [vmem:[%s2225_s20 + $0x2a8] sm:$0xff]  ;;  %v487_v49 = vld [vmem:[%s2225_s20 + $0x320] sm:$0xff]  ;;  %v599_v54 = vpack.c.bf16 %v471_v39, %v471_v39  ;;  %v616_v16 = vpack.c.bf16 %v488_v60, %v488_v60  ;;  %v907_v60 = vunpack.c.l.b16 %v631_v32 }
  0x89   : > { %1101 = vmatpush.bf16.xpose.msrb.mxu0 %v2475_v26  ;;  %2856 = vst [vmem:[#allocation24_spill] sm:$0xff] %v2489_v17  ;;  %v862_v57 = vunpack.c.l.b16 %v586_v37  ;;  %v2509_v7 = vpack.c.b16 %v894_v38, %v893_v46  ;;  %v456_v22 = vld [vmem:[%s2225_s20 + $0x228] sm:$0xff]  ;;  %v615_v28 = vpack.c.bf16 %v487_v49, %v487_v49  ;;  %v632_v37 = vpack.c.bf16 %v504_v9, %v504_v9  ;;  %v486_v49 = vld [vmem:[%s2225_s20 + $0x318] sm:$0xff]  ;;  %v501_v9 = vld [vmem:[%s2225_s20 + $0x390] sm:$0xff] }
  0x8a   : > { %2858 = vst [vmem:[#allocation26_spill] sm:$0xff] %v2493_v3  ;;  %v584_v42 = vpack.c.bf16 %v456_v22, %v456_v22  ;;  %v875_v46 = vunpack.c.l.b16 %v599_v54  ;;  %v597_v22 = vpack.c.bf16 %v469_v43, %v469_v43  ;;  %v629_v32 = vpack.c.bf16 %v501_v9, %v501_v9  ;;  %v499_v9 = vld [vmem:[%s2225_s20 + $0x380] sm:$0xff] }
  0x8b   : > { %2861 = vst [vmem:[#allocation29_spill] sm:$0xff] %v2509_v7  ;;  %v891_v39 = vunpack.c.l.b16 %v615_v28  ;;  %v614_v28 = vpack.c.bf16 %v486_v49, %v486_v49 }
  0x8c   : > { %v860_v58 = vunpack.c.l.b16 %v584_v42 }
  0x8e   : > { %1115 = vmatpush.bf16.xpose.msrb.mxu1 %v2489_v17  ;;  %v600_v17 = vpack.c.bf16 %v472_v48, %v472_v48  ;;  %v892_v48 = vunpack.c.l.b16 %v616_v16  ;;  %v453_v16 = vld [vmem:[%s2225_s20 + $0x210] sm:$0xff] }
  0x8f   : > { %1128 = vmatpush.bf16.xpose.msrb.mxu2 %v2491_v10  ;;  %v583_v10 = vpack.c.bf16 %v455_v29, %v455_v29  ;;  %v502_v29 = vld [vmem:[%s2225_s20 + $0x398] sm:$0xff]  ;;  %v581_v42 = vpack.c.bf16 %v453_v16, %v453_v16 }
  0x90   : > { %1141 = vmatpush.bf16.xpose.msrb.mxu3 %v2493_v3  ;;  %v2513_v3 = vpack.c.b16 %v910_v45, %v909_v41  ;;  %v876_v38 = vunpack.c.l.b16 %v600_v17  ;;  %v470_v41 = vld [vmem:[%s2225_s20 + $0x298] sm:$0xff]  ;;  %v485_v45 = vld [vmem:[%s2225_s20 + $0x310] sm:$0xff]  ;;  %v2531_v26 = vpack.c.b16 %v892_v48, %v891_v39  ;;  %v905_v39 = vunpack.c.l.b16 %v629_v32 }
  0x91   : > { %1102 = vmatpush.bf16.xpose.msrb.mxu0 %v2495_v31  ;;  %v2515_v31 = vpack.c.b16 %v862_v57, %v861_v55  ;;  %v908_v55 = vunpack.c.l.b16 %v632_v37  ;;  %v859_v57 = vunpack.c.l.b16 %v583_v10  ;;  %v598_v54 = vpack.c.bf16 %v470_v41, %v470_v41 }
  0x92   : > { %2862 = vst [vmem:[#allocation30_spill] sm:$0xff] %v2513_v3  ;;  %v613_v17 = vpack.c.bf16 %v485_v45, %v485_v45  ;;  %v630_v10 = vpack.c.bf16 %v502_v29, %v502_v29  ;;  %v873_v41 = vunpack.c.l.b16 %v597_v22  ;;  %v500_v29 = vld [vmem:[%s2225_s20 + $0x388] sm:$0xff] }
  0x93   : > { %2863 = vst [vmem:[#allocation31_spill] sm:$0xff] %v2515_v31  ;;  %v2535_v37 = vpack.c.b16 %v860_v58, %v859_v57  ;;  %v874_v45 = vunpack.c.l.b16 %v598_v54  ;;  %v857_v57 = vunpack.c.l.b16 %v581_v42 }
  0x94   : > { %2865 = vst [vmem:[#allocation33_spill] sm:$0xff] %v2531_v26  ;;  %v889_v49 = vunpack.c.l.b16 %v613_v17  ;;  %v906_v48 = vunpack.c.l.b16 %v630_v10  ;;  %v451_v17 = vld [vmem:[%s2225_s20 + $0x200] sm:$0xff] }
  0x95   : > { %v2547_v22 = vpack.c.b16 %v874_v45, %v873_v41  ;;  %v579_v42 = vpack.c.bf16 %v451_v17, %v451_v17 }
  0x96   : > { %1116 = vmatpush.bf16.xpose.msrb.mxu1 %v2507_v14  ;;  %v454_v14 = vld [vmem:[%s2225_s20 + $0x218] sm:$0xff]  ;;  %v2553_v10 = vpack.c.b16 %v906_v48, %v905_v39 }
  0x97   : > { %1129 = vmatpush.bf16.xpose.msrb.mxu2 %v2509_v7  ;;  %v2529_v7 = vpack.c.b16 %v876_v38, %v875_v46  ;;  %v582_v43 = vpack.c.bf16 %v454_v14, %v454_v14  ;;  %v890_v46 = vunpack.c.l.b16 %v614_v28  ;;  %v467_v38 = vld [vmem:[%s2225_s20 + $0x280] sm:$0xff]  ;;  %v484_v14 = vld [vmem:[%s2225_s20 + $0x308] sm:$0xff]  ;;  %v855_v39 = vunpack.c.l.b16 %v579_v42 }
  0x98   : > { %1142 = vmatpush.bf16.xpose.msrb.mxu3 %v2513_v3  ;;  %v2533_v3 = vpack.c.b16 %v908_v55, %v907_v60  ;;  %v468_v60 = vld [vmem:[%s2225_s20 + $0x288] sm:$0xff]  ;;  %v483_v55 = vld [vmem:[%s2225_s20 + $0x300] sm:$0xff]  ;;  %v595_v16 = vpack.c.bf16 %v467_v38, %v467_v38  ;;  %v612_v32 = vpack.c.bf16 %v484_v14, %v484_v14 }
  0x99   : > { %1103 = vmatpush.bf16.xpose.msrb.mxu0 %v2515_v31  ;;  %2864 = vst [vmem:[#allocation32_spill] sm:$0xff] %v2529_v7  ;;  %v858_v58 = vunpack.c.l.b16 %v582_v43  ;;  %v2549_v54 = vpack.c.b16 %v890_v46, %v889_v49  ;;  %v452_v28 = vld [vmem:[%s2225_s20 + $0x208] sm:$0xff]  ;;  %v628_v31 = vpack.c.bf16 %v500_v29, %v500_v29 }
  0x9a   : > { %2866 = vst [vmem:[#allocation34_spill] sm:$0xff] %v2533_v3  ;;  %v580_v43 = vpack.c.bf16 %v452_v28, %v452_v28  ;;  %v871_v41 = vunpack.c.l.b16 %v595_v16  ;;  %v888_v46 = vunpack.c.l.b16 %v612_v32 }
  0x9b   : > { %v2555_v52 = vpack.c.b16 %v858_v58, %v857_v57 }
  0x9c   : > { %v856_v48 = vunpack.c.l.b16 %v580_v43 }
  0x9e   : > { %1117 = vmatpush.bf16.xpose.msrb.mxu1 %v2529_v7  ;;  %v596_v7 = vpack.c.bf16 %v468_v60, %v468_v60  ;;  %v904_v60 = vunpack.c.l.b16 %v628_v31  ;;  %v2567_v58 = vpack.c.b16 %v856_v48, %v855_v39 }
  0x9f   : > { %1130 = vmatpush.bf16.xpose.msrb.mxu2 %v2531_v26  ;;  %v627_v26 = vpack.c.bf16 %v499_v9, %v499_v9 }
  0xa0   : > { %1143 = vmatpush.bf16.xpose.msrb.mxu3 %v2533_v3  ;;  %v611_v3 = vpack.c.bf16 %v483_v55, %v483_v55  ;;  %v872_v45 = vunpack.c.l.b16 %v596_v7 }
  0xa1   : > { %1104 = vmatpush.bf16.xpose.msrb.mxu0 %v2535_v37  ;;  %v903_v38 = vunpack.c.l.b16 %v627_v26 }
  0xa2   : > { %v887_v49 = vunpack.c.l.b16 %v611_v3  ;;  %v2561_v55 = vpack.c.b16 %v872_v45, %v871_v41 }
  0xa3   : > { %v2565_v57 = vpack.c.b16 %v904_v60, %v903_v38 }
  0xa4   : > { %v2563_v14 = vpack.c.b16 %v888_v46, %v887_v49 }
  0xa6   : > { %1118 = vmatpush.bf16.xpose.msrb.mxu1 %v2547_v22 }
  0xa7   : > { %1131 = vmatpush.bf16.xpose.msrb.mxu2 %v2549_v54 }
  0xa8   : > { %1144 = vmatpush.bf16.xpose.msrb.mxu3 %v2553_v10 }
  0xa9   : > { %1105 = vmatpush.bf16.xpose.msrb.mxu0 %v2555_v52 }
  0xae   : > { %1119 = vmatpush.bf16.xpose.msrb.mxu1 %v2561_v55 }
  0xaf   : > { %1132 = vmatpush.bf16.xpose.msrb.mxu2 %v2563_v14 }
  0xb0   : > { %1145 = vmatpush.bf16.xpose.msrb.mxu3 %v2565_v57 }
  0xb1   : > { %1106 = vmatpush.bf16.xpose.msrb.mxu0 %v2567_v58 }
  0xb5   : > { %1120 = vmatmul.bf16.vlgmr.msrb.gmra.mxu1 %v2438_v47 }
  0xb6   : > { %1194 = vmatpush.bf16.msra.mxu1 %v2244_v27  ;;  %1133 = vmatmul.bf16.vlgmr.msrb.gmra.mxu2 %v2438_v47  ;;  %v2867_v27 = vld [vmem:[#allocation13_spill] sm:$0xff] }
  0xb7   : > { %1226 = vmatpush.bf16.msra.mxu2 %v2248_v33  ;;  %1146 = vmatmul.bf16.vlgmr.msrb.gmra.mxu3 %v2438_v47  ;;  %v2868_v33 = vld [vmem:[#allocation17_spill] sm:$0xff] }
  0xb8   : > { %1258 = vmatpush.bf16.msra.mxu3 %v2250_v34  ;;  %1107 = vmatmul.bf16.vlgmr.msrb.gmra.mxu0 %v2438_v47  ;;  %v2869_v34 = vld [vmem:[#allocation18_spill] sm:$0xff] }
  0xb9   : > { %1162 = vmatpush.bf16.msra.mxu0 %v2258_v44  ;;  %v2870_v44 = vld [vmem:[#allocation14_spill] sm:$0xff] }
  0xba   : > { %1195 = vmatpush.bf16.msra.mxu1 %v2265_v59  ;;  %v2871_v59 = vld [vmem:[#allocation19_spill] sm:$0xff] }
  0xbb   : > { %1227 = vmatpush.bf16.msra.mxu2 %v2269_v1  ;;  %v2872_v1 = vld [vmem:[#allocation21_spill] sm:$0xff] }
  0xbc   : > { %1259 = vmatpush.bf16.msra.mxu3 %v2271_v2  ;;  %v2873_v2 = vld [vmem:[#allocation22_spill] sm:$0xff] }
  0xbd   : > { %1163 = vmatpush.bf16.msra.mxu0 %v2273_v6  ;;  %v2874_v6 = vld [vmem:[#allocation16_spill] sm:$0xff] }
  0xbe   : > { %1196 = vmatpush.bf16.msra.mxu1 %v2285_v20  ;;  %v2875_v20 = vld [vmem:[#allocation23_spill] sm:$0xff] }
  0xbf   : > { %1228 = vmatpush.bf16.msra.mxu2 %v2287_v23  ;;  %v2876_v23 = vld [vmem:[#allocation25_spill] sm:$0xff] }
  0xc0   : > { %1260 = vmatpush.bf16.msra.mxu3 %v2291_v30  ;;  %v2877_v30 = vld [vmem:[#allocation26_spill] sm:$0xff] }
  0xc1   : > { %1164 = vmatpush.bf16.msra.mxu0 %v2293_v36  ;;  %v2878_v36 = vld [vmem:[#allocation20_spill] sm:$0xff] }
  0xc2   : > { %1197 = vmatpush.bf16.msra.mxu1 %v2305_v56  ;;  %v2879_v56 = vld [vmem:[#allocation27_spill] sm:$0xff] }
  0xc3   : > { %1229 = vmatpush.bf16.msra.mxu2 %v2309_v62  ;;  %v2880_v62 = vld [vmem:[#allocation29_spill] sm:$0xff] }
  0xc4   : > { %1261 = vmatpush.bf16.msra.mxu3 %v2311_v63  ;;  %v2881_v63 = vld [vmem:[#allocation30_spill] sm:$0xff] }
  0xc5   : > { %1165 = vmatpush.bf16.msra.mxu0 %v2313_v5  ;;  %v2882_v5 = vld [vmem:[#allocation24_spill] sm:$0xff] }
  0xc6   : > { %1198 = vmatpush.bf16.msra.mxu1 %v2325_v21  ;;  %v2883_v21 = vld [vmem:[#allocation31_spill] sm:$0xff] }
  0xc7   : > { %1230 = vmatpush.bf16.msra.mxu2 %v2327_v25  ;;  %v2884_v25 = vld [vmem:[#allocation33_spill] sm:$0xff] }
  0xc8   : > { %1262 = vmatpush.bf16.msra.mxu3 %v2331_v35  ;;  %v2885_v35 = vld [vmem:[#allocation34_spill] sm:$0xff] }
  0xc9   : > { %1166 = vmatpush.bf16.msra.mxu0 %v2333_v40  ;;  %v2886_v40 = vld [vmem:[#allocation28_spill] sm:$0xff] }
  0xca   : > { %1199 = vmatpush.bf16.msra.mxu1 %v2347_v8  ;;  %v2887_v8 = vld [vmem:[#allocation32_spill] sm:$0xff] }
  0xcb   : > { %1231 = vmatpush.bf16.msra.mxu2 %v2349_v11  ;;  %v643_v11 = vld [vmem:[%s377_s22] sm:$0xff]  ;;  %s1609_s22 = scalar_lea.hbm %s2812_s8, %s1846_s13 }
  0xcc   : > { %1263 = vmatpush.bf16.msra.mxu3 %v2351_v12  ;;  %vm644_vm0 = vcmp.ne.s32.totalorder %v643_v11, 0  ;;  %s1613_s19 = sshll.u32 %s1609_s22, 4  ;;  %s1614_s19 = int_to_ptr.hbm [resolvable:$true] %s1613_s19 }
  0xcd   : > { %1167 = vmatpush.bf16.msra.mxu0 %v2355_v18  ;;  %v2089_v18 = vmov 0.0  }
  0xce   : > { %1200 = vmatpush.bf16.msra.mxu1 %v2369_v50  ;;  %v645_v50 = vsel %vm644_vm0, -1e+30, %v2089_v18 }
  0xcf   : > { %1232 = vmatpush.bf16.msra.mxu2 %v2371_v51  ;;  %v649_v51 = vperm.slane %v645_v50, 2  ;;  %v652_v9 = vperm.slane %v645_v50, 5  ;;  %v653_v17 = vperm.slane %v645_v50, 6  ;;  %v654_v28 = vperm.slane %v645_v50, 7 }
  0xd0   : > { %1264 = vmatpush.bf16.msra.mxu3 %v2375_v53  ;;  %v650_v53 = vperm.slane %v645_v50, 3  ;;  %v651_v41 = vperm.slane %v645_v50, 4 }
  0xd1   : > { %1168 = vmatpush.bf16.msra.mxu0 %v2382_v13 }
  0xd2   : > { %1201 = vmatpush.bf16.msra.mxu1 %v2867_v27 }
  0xd3   : > { %1233 = vmatpush.bf16.msra.mxu2 %v2402_v61 }
  0xd4   : > { %1265 = vmatpush.bf16.msra.mxu3 %v2404_v0 }
  0xd5   : > { %1169 = vmatpush.bf16.msra.mxu0 %v2419_v15  ;;  %v648_v15 = vperm.slane %v645_v50, 1 }
  0xd6   : > { %1322 = vmatpush.bf16.msrb.mxu1 %v2870_v44 }
  0xd7   : > { %1354 = vmatpush.bf16.msrb.mxu2 %v2408_v4 }
  0xd8   : > { %1386 = vmatpush.bf16.msrb.mxu3 %v2417_v19  ;;  %v647_v19 = vperm.slane %v645_v50, 0 }
  0xd9   : > { %1290 = vmatpush.bf16.msrb.mxu0 %v2422_v24 }
  0xda   : > { %1323 = vmatpush.bf16.msrb.mxu1 %v2874_v6 }
  0xdb   : > { %1355 = vmatpush.bf16.msrb.mxu2 %v2868_v33 }
  0xdc   : > { %1387 = vmatpush.bf16.msrb.mxu3 %v2869_v34 }
  0xdd   : > { %1291 = vmatpush.bf16.msrb.mxu0 %v2871_v59 }
  0xde   : > { %1324 = vmatpush.bf16.msrb.mxu1 %v2878_v36 }
  0xdf   : > { %1356 = vmatpush.bf16.msrb.mxu2 %v2872_v1 }
  0xe0   : > { %1388 = vmatpush.bf16.msrb.mxu3 %v2873_v2 }
  0xe1   : > { %1292 = vmatpush.bf16.msrb.mxu0 %v2875_v20 }
  0xe2   : > { %1325 = vmatpush.bf16.msrb.mxu1 %v2882_v5 }
  0xe3   : > { %1357 = vmatpush.bf16.msrb.mxu2 %v2876_v23 }
  0xe4   : > { %1389 = vmatpush.bf16.msrb.mxu3 %v2877_v30 }
  0xe5   : > { %1293 = vmatpush.bf16.msrb.mxu0 %v2879_v56 }
  0xe6   : > { %1326 = vmatpush.bf16.msrb.mxu1 %v2886_v40 }
  0xe7   : > { %1358 = vmatpush.bf16.msrb.mxu2 %v2880_v62 }
  0xe8   : > { %1390 = vmatpush.bf16.msrb.mxu3 %v2881_v63 }
  0xe9   : > { %1294 = vmatpush.bf16.msrb.mxu0 %v2883_v21 }
  0xea   : > { %1327 = vmatpush.bf16.msrb.mxu1 %v2887_v8 }
  0xeb   : > { %1359 = vmatpush.bf16.msrb.mxu2 %v2884_v25 }
  0xec   : > { %1391 = vmatpush.bf16.msrb.mxu3 %v2885_v35 }
  0xed   : > { %1295 = vmatpush.bf16.msrb.mxu0 %v2535_v37 }
  0xee   : > { %1328 = vmatpush.bf16.msrb.mxu1 %v2547_v22 }
  0xef   : > { %1360 = vmatpush.bf16.msrb.mxu2 %v2549_v54 }
  0xf0   : > { %1392 = vmatpush.bf16.msrb.mxu3 %v2553_v10 }
  0xf1   : > { %1296 = vmatpush.bf16.msrb.mxu0 %v2555_v52 }
  0xf2   : > { %1329 = vmatpush.bf16.msrb.mxu1 %v2561_v55  ;;  %v1069_v12 = vpop.f32.mrf.mxu1 }
  0xf3   : > { %1361 = vmatpush.bf16.msrb.mxu2 %v2563_v14  ;;  %v1070_v31 = vadd.f32 %v1069_v12, %v648_v15 }
  0xf4   : > { %1393 = vmatpush.bf16.msrb.mxu3 %v2565_v57 }
  0xf5   : > { %1297 = vmatpush.bf16.msrb.mxu0 %v2567_v58  ;;  %v1056_v13 = vpop.f32.mrf.mxu0 }
  0xf6   : > { %v1057_v26 = vadd.f32 %v1056_v13, %v647_v19 }
  0xf9   : > { %v1082_v52 = vpop.f32.mrf.mxu2 }
  0xfa   : > { %v1095_v61 = vpop.f32.mrf.mxu3  ;;  %v1083_v0 = vadd.f32 %v1082_v52, %v649_v51  ;;  %v1071_v4 = vpop.f32.mrf.mxu1 }
  0xfb   : > { %v1096_v3 = vadd.f32 %v1095_v61, %v650_v53 }
  0xfc   : > { %1215 = vmax.xlane.f32.xlu0 %v1083_v0 }
  0xfd   : > { %1247 = vmax.xlane.f32.xlu1 %v1096_v3  ;;  %v1058_v24 = vpop.f32.mrf.mxu0 }
 0x101   : > { %v1084_v7 = vpop.f32.mrf.mxu2 }
 0x102   : > { %v1097_v37 = vpop.f32.mrf.mxu3 }
 0x104   : > { %1151 = vmax.xlane.f32.xlu0 %v1057_v26 }
 0x105   : > { %1183 = vmax.xlane.f32.xlu1 %v1070_v31 }
 0x132   : > { %v1121_v29 = vpop.f32.mrf.mxu1 }
 0x133   : > { %v1122_v22 = vadd.f32 %v1121_v29, %v652_v9 }
 0x135   : > { %v1108_v54 = vpop.f32.mrf.mxu0  ;;  %1311 = vmax.xlane.f32.xlu1 %v1122_v22 }
 0x136   : > { %v1109_v49 = vadd.f32 %v1108_v54, %v651_v41 }
 0x139   : > { %v1134_v16 = vpop.f32.mrf.mxu2 }
 0x13a   : > { %v1135_v32 = vadd.f32 %v1134_v16, %v653_v17  ;;  %v1147_v10 = vpop.f32.mrf.mxu3  ;;  %v1123_v43 = vpop.f32.mrf.mxu1 }
 0x13b   : > { %v1148_v42 = vadd.f32 %v1147_v10, %v654_v28 }
 0x13c   : > { %1343 = vmax.xlane.f32.xlu2 %v1135_v32 }
 0x13d   : > { %1375 = vmax.xlane.f32.xlu0 %v1148_v42  ;;  %v1110_v45 = vpop.f32.mrf.mxu0 }
 0x141   : > { %v1136_v46 = vpop.f32.mrf.mxu2 }
 0x142   : > { %v1149_v38 = vpop.f32.mrf.mxu3 }
 0x144   : > { %1279 = vmax.xlane.f32.xlu2 %v1109_v49 }
 0x16f   : > { %v1216_v39 = vpop.xlane.xlu0 %1215 }
 0x170   : > { %v1248_v60 = vpop.xlane.xlu1 %1247  ;;  %v1217_v55 = vsub.f32 %v1083_v0, %v1216_v39 }
 0x171   : > { %v1249_v48 = vsub.f32 %v1096_v3, %v1248_v60 }
 0x172   : > { %v1218_v57 = vmul.f32 1.442695, %v1217_v55  ;;  %v2888_v55 = vld [vmem:[#allocation15_spill] sm:$0xff] }
 0x173   : > { %v1250_v14 = vmul.f32 1.442695, %v1249_v48 }
 0x175   : > { %1923 = vpow2.f32 %v1250_v14 }
 0x176   : > { %1925 = vpow2.f32 %v1218_v57 }
 0x177   : > { %v1152_v27 = vpop.xlane.xlu0 %1151 }
 0x178   : > { %v1184_v58 = vpop.xlane.xlu1 %1183  ;;  %v1153_v34 = vsub.f32 %v1057_v26, %v1152_v27 }
 0x179   : > { %v1185_v33 = vsub.f32 %v1070_v31, %v1184_v58 }
 0x17a   : > { %v1154_v1 = vmul.f32 1.442695, %v1153_v34 }
 0x17b   : > { %v1924_v44 = vpop.eup %1923  ;;  %v1186_v59 = vmul.f32 1.442695, %v1185_v33 }
 0x17c   : > { %v1926_v2 = vpop.eup %1925  ;;  %1252 = vadd.xlane.f32.xlu1 %v1924_v44 }
 0x17d   : > { %1927 = vpow2.f32 %v1186_v59  ;;  %1220 = vadd.xlane.f32.xlu2 %v1926_v2 }
 0x17e   : > { %1929 = vpow2.f32 %v1154_v1 }
 0x183   : > { %v1928_v6 = vpop.eup %1927 }
 0x184   : > { %v1930_v20 = vpop.eup %1929 }
 0x185   : > { %1188 = vadd.xlane.f32.xlu2 %v1928_v6  ;;  %1156 = vadd.xlane.f32.xlu0 %v1930_v20 }
 0x1a8   : > { %v1312_v30 = vpop.xlane.xlu1 %1311 }
 0x1a9   : > { %v1313_v5 = vsub.f32 %v1122_v22, %v1312_v30 }
 0x1ab   : > { %v1314_v25 = vmul.f32 1.442695, %v1313_v5 }
 0x1af   : > { %v1344_v23 = vpop.xlane.xlu2 %1343 }
 0x1b0   : > { %v1345_v36 = vsub.f32 %v1135_v32, %v1344_v23  ;;  %v1376_v56 = vpop.xlane.xlu0 %1375 }
 0x1b1   : > { %v1377_v62 = vsub.f32 %v1148_v42, %v1376_v56 }
 0x1b2   : > { %v1346_v63 = vmul.f32 1.442695, %v1345_v36 }
 0x1b3   : > { %v1378_v21 = vmul.f32 1.442695, %v1377_v62 }
 0x1b4   : > { %1931 = vpow2.f32 %v1346_v63 }
 0x1b5   : > { %1933 = vpow2.f32 %v1378_v21 }
 0x1b6   : > { %1935 = vpow2.f32 %v1314_v25 }
 0x1b7   : > { %v1280_v35 = vpop.xlane.xlu2 %1279 }
 0x1b8   : > { %v1281_v40 = vsub.f32 %v1109_v49, %v1280_v35 }
 0x1ba   : > { %v1932_v8 = vpop.eup %1931  ;;  %v1282_v11 = vmul.f32 1.442695, %v1281_v40  ;;  %v1867_v40 = vld [vmem:[%s2808_s4 + $0x38] sm:$0xff] }
 0x1bb   : > { %v1934_v12 = vpop.eup %1933  ;;  %1348 = vadd.xlane.f32.xlu0 %v1932_v8 }
 0x1bc   : > { %1937 = vpow2.f32 %v1282_v11  ;;  %1380 = vadd.xlane.f32.xlu2 %v1934_v12  ;;  %v1936_v18 = vpop.eup %1935  ;;  %v1866_v11 = vld [vmem:[%s2808_s4 + $0x30] sm:$0xff] }
 0x1c2   : > { %v1938_v50 = vpop.eup %1937 }
 0x1c3   : > { %1284 = vadd.xlane.f32.xlu1 %v1938_v50  ;;  %1316 = vadd.xlane.f32.xlu0 %v1936_v18 }
 0x1ef   : > { %v1253_v51 = vpop.xlane.xlu1 %1252 }
 0x1f0   : > { %1939 = vrcp.f32 %v1253_v51  ;;  %v1221_v53 = vpop.xlane.xlu2 %1220  ;;  %v1864_v51 = vld [vmem:[%s2808_s4 + $0x20] sm:$0xff] }
 0x1f1   : > { %1941 = vrcp.f32 %v1221_v53  ;;  %v1856_v53 = vld [vmem:[%s2807_s3 + $0x20] sm:$0xff] }
 0x1f6   : > { %v1940_v13 = vpop.eup %1939 }
 0x1f7   : > { %v1942_v52 = vpop.eup %1941  ;;  %v1255_v61 = vmul.f32 %v1940_v13, %v1924_v44  ;;  %v1863_v13 = vld [vmem:[%s2808_s4 + $0x18] sm:$0xff] }
 0x1f8   : > { %v1223_v0 = vmul.f32 %v1942_v52, %v1926_v2  ;;  %v1189_v3 = vpop.xlane.xlu2 %1188  ;;  %v1157_v4 = vpop.xlane.xlu0 %1156  ;;  %v1862_v52 = vld [vmem:[%s2808_s4 + $0x10] sm:$0xff] }
 0x1f9   : > { %1943 = vrcp.f32 %v1189_v3  ;;  %v1256_v19 = vpack.c.bf16 %v1255_v61, %v1255_v61  ;;  %v1861_v61 = vld [vmem:[%s2808_s4 + $0x8] sm:$0xff]  ;;  %v1860_v3 = vld [vmem:[%s2808_s4] sm:$0xff] }
 0x1fa   : > { %1945 = vrcp.f32 %v1157_v4  ;;  %v1224_v15 = vpack.c.bf16 %v1223_v0, %v1223_v0  ;;  %v1855_v0 = vld [vmem:[%s2807_s3 + $0x18] sm:$0xff]  ;;  %v1854_v4 = vld [vmem:[%s2807_s3 + $0x10] sm:$0xff] }
 0x1fb   : > { %1257 = vst [vmem:[%s2650_s29 + $0xc] sm:$0xf] %v1256_v19  ;;  %1266 = vmatmul.bf16.vlgmr.msra.gmra.mxu3 %v1256_v19  ;;  %v1853_v19 = vld [vmem:[%s2807_s3 + $0x8] sm:$0xff] }
 0x1fc   : > { %1225 = vst [vmem:[%s2650_s29 + $0x8] sm:$0xf] %v1224_v15  ;;  %1234 = vmatmul.bf16.vlgmr.msra.gmra.mxu2 %v1224_v15  ;;  %v1852_v15 = vld [vmem:[%s2807_s3] sm:$0xff] }
 0x1ff   : > { %v1944_v24 = vpop.eup %1943 }
 0x200   : > { %v1946_v26 = vpop.eup %1945  ;;  %v1191_v31 = vmul.f32 %v1944_v24, %v1928_v6  ;;  %v383_v24 = vlaneseq }
 0x201   : > { %v1159_v7 = vmul.f32 %v1946_v26, %v1930_v20 }
 0x202   : > { %v1192_v37 = vpack.c.bf16 %v1191_v31, %v1191_v31  ;;  %v384_v31 = vand.u32 127, %v383_v24 }
 0x203   : > { %v1160_v9 = vpack.c.bf16 %v1159_v7, %v1159_v7 }
 0x204   : > { %1193 = vst [vmem:[%s2650_s29 + $0x4] sm:$0xf] %v1192_v37  ;;  %1202 = vmatmul.bf16.vlgmr.msra.gmra.mxu1 %v1192_v37  ;;  %vm1210_vm1 = vcmp.eq.s32.totalorder %v384_v31, 1  ;;  %vm1178_vm2 = vcmp.eq.s32.totalorder %v384_v31, 0  ;;  %vm1242_vm3 = vcmp.eq.s32.totalorder %v384_v31, 2  ;;  %vm1274_vm4 = vcmp.eq.s32.totalorder %v384_v31, 3 }
 0x205   : > { %1161 = vst [vmem:[%s2650_s29] sm:$0xf] %v1160_v9  ;;  %1170 = vmatmul.bf16.vlgmr.msra.gmra.mxu0 %v1160_v9  ;;  %vm1306_vm5 = vcmp.eq.s32.totalorder %v384_v31, 4  ;;  %vm1338_vm6 = vcmp.eq.s32.totalorder %v384_v31, 5  ;;  %vm1370_vm7 = vcmp.eq.s32.totalorder %v384_v31, 6  ;;  %vm1402_vm8 = vcmp.eq.s32.totalorder %v384_v31, 7 }
 0x206   : > { %1490 = vmatpush.bf16.msra.mxu0 %v1867_v40 }
 0x20a   : > { %1491 = vmatpush.bf16.msra.mxu0 %v1866_v11 }
 0x22e   : > { %v1349_v29 = vpop.xlane.xlu0 %1348 }
 0x22f   : > { %v1381_v22 = vpop.xlane.xlu2 %1380  ;;  %1947 = vrcp.f32 %v1349_v29 }
 0x230   : > { %1949 = vrcp.f32 %v1381_v22 }
 0x235   : > { %v1948_v54 = vpop.eup %1947 }
 0x236   : > { %v1950_v17 = vpop.eup %1949  ;;  %v1351_v28 = vmul.f32 %v1948_v54, %v1932_v8  ;;  %v1285_v16 = vpop.xlane.xlu1 %1284  ;;  %v1859_v8 = vld [vmem:[%s2807_s3 + $0x38] sm:$0xff] }
 0x237   : > { %v1317_v32 = vpop.xlane.xlu0 %1316  ;;  %v1383_v10 = vmul.f32 %v1950_v17, %v1934_v12  ;;  %1951 = vrcp.f32 %v1285_v16  ;;  %1551 = vmatpush.bf16.msra.mxu1 %v1859_v8  ;;  %v1858_v12 = vld [vmem:[%s2807_s3 + $0x30] sm:$0xff] }
 0x238   : > { %1953 = vrcp.f32 %v1317_v32  ;;  %v1352_v42 = vpack.c.bf16 %v1351_v28, %v1351_v28 }
 0x239   : > { %v1384_v43 = vpack.c.bf16 %v1383_v10, %v1383_v10 }
 0x23a   : > { %1353 = vst [vmem:[%s2650_s29 + $0x18] sm:$0xf] %v1352_v42  ;;  %1362 = vmatmul.bf16.vlgmr.msrb.gmra.mxu2 %v1352_v42 }
 0x23b   : > { %1385 = vst [vmem:[%s2650_s29 + $0x1c] sm:$0xf] %v1384_v43  ;;  %1394 = vmatmul.bf16.vlgmr.msrb.gmra.mxu3 %v1384_v43  ;;  %1552 = vmatpush.bf16.msra.mxu1 %v1858_v12 }
 0x23d   : > { %v1952_v41 = vpop.eup %1951 }
 0x23e   : > { %v1954_v45 = vpop.eup %1953  ;;  %v1287_v49 = vmul.f32 %v1952_v41, %v1938_v50  ;;  %v1857_v50 = vld [vmem:[%s2807_s3 + $0x28] sm:$0xff] }
 0x23f   : > { %v1319_v46 = vmul.f32 %v1954_v45, %v1936_v18  ;;  %v1865_v18 = vld [vmem:[%s2808_s4 + $0x28] sm:$0xff]  ;;  %1553 = vmatpush.bf16.msra.mxu1 %v1857_v50 }
 0x240   : > { %v1288_v38 = vpack.c.bf16 %v1287_v49, %v1287_v49  ;;  %1492 = vmatpush.bf16.msra.mxu0 %v1865_v18 }
 0x241   : > { %v1320_v60 = vpack.c.bf16 %v1319_v46, %v1319_v46 }
 0x242   : > { %1289 = vst [vmem:[%s2650_s29 + $0x10] sm:$0xf] %v1288_v38  ;;  %1298 = vmatmul.bf16.vlgmr.msrb.gmra.mxu0 %v1288_v38 }
 0x243   : > { %1321 = vst [vmem:[%s2650_s29 + $0x14] sm:$0xf] %v1320_v60  ;;  %1330 = vmatmul.bf16.vlgmr.msrb.gmra.mxu1 %v1320_v60  ;;  %s2001_s29 = sshra.s32 %s1614_s19, 4  ;;  %s2002_s29 = int_to_ptr.hbm [resolvable:$true] %s2001_s29 }
 0x244   : > { %1493 = vmatpush.bf16.msra.mxu0 %v1864_v51  ;;  %1554 = vmatpush.bf16.msra.mxu1 %v1856_v53  ;;  %s2003_s14 = scalar_lea.hbm %s2002_s29, 8  ;;  %p2008_p1 = scmp.lt.s32.totalorder %s2002_s29, %s2812_s8 }
 0x245   : > { %p2004_p9 = scmp.ne.s32.totalorder %s2002_s29, %s2003_s14  ;;  %p2009_p3 = scmp.lt.s32.totalorder %s2007_s9, %s2003_s14 }
 0x247   : > { %p2005_p13 = pnand %p2004_p9, %p2185_p11  ;;  %p2010_p4 = por %p2009_p3, %p2008_p1 }
 0x248   : > { %1494 = vmatpush.bf16.msra.mxu0 %v1863_v13  ;;  %1555 = vmatpush.bf16.msra.mxu1 %v1855_v0 }
 0x249   : > { %p2006_p0 = pneg %p2005_p13 }
 0x24b   : > { %p2011_p7 = pnand %p2010_p4, %p2006_p0 }
 0x24c   : > { %1495 = vmatpush.bf16.msra.mxu0 %v1862_v52  ;;  %1556 = vmatpush.bf16.msra.mxu1 %v1854_v4 }
 0x250   : > { %1496 = vmatpush.bf16.msra.mxu0 %v1861_v61  ;;  %1557 = vmatpush.bf16.msra.mxu1 %v1853_v19 }
 0x254   : > { %1497 = vmatpush.bf16.msra.mxu0 %v1860_v3  ;;  %1558 = vmatpush.bf16.msra.mxu1 %v1852_v15 }
 0x257   : > { %1498 = vmatmul.bf16.vlgmr.msra.gmra.mxu0 %v2438_v47 }
 0x27e   : > { %v2660_v39 = vpop.f32.mrf.mxu3 }
 0x27f   : > { %v2662_v48 = vpop.f32.mrf.mxu2  ;;  %v1271_v2 = vmul.f32 %v2660_v39, %v2888_v55 }
 0x280   : > { %v1239_v14 = vmul.f32 %v2662_v48, %v2888_v55 }
 0x281   : > { %v2666_v57 = vpop.f32.mrf.mxu1 }
 0x282   : > { %v2668_v58 = vpop.f32.mrf.mxu0  ;;  %1240 = vadd.xlane.f32.xlu0 %v1239_v14  ;;  %v1207_v27 = vmul.f32 %v2666_v57, %v2888_v55 }
 0x283   : > { %v1175_v33 = vmul.f32 %v2668_v58, %v2888_v55 }
 0x284   : > { %1208 = vadd.xlane.f32.xlu2 %v1207_v27 }
 0x285   : > { %1176 = vadd.xlane.f32.xlu1 %v1175_v33 }
 0x286   : > { %v1269_v34 = vpop.f32.mrf.mxu3 }
 0x287   : > { %v1237_v44 = vpop.f32.mrf.mxu2 }
 0x289   : > { %v1205_v59 = vpop.f32.mrf.mxu1 }
 0x28a   : > { %v1173_v1 = vpop.f32.mrf.mxu0 }
 0x28d   : > { %1272 = vadd.xlane.f32.xlu1 %v1271_v2 }
 0x2bd   : > { %v2676_v6 = vpop.f32.mrf.mxu2 }
 0x2be   : > { %v2678_v20 = vpop.f32.mrf.mxu3  ;;  %v1367_v23 = vmul.f32 %v2676_v6, %v2888_v55 }
 0x2bf   : > { %v2682_v30 = vpop.f32.mrf.mxu0  ;;  %v1399_v35 = vmul.f32 %v2678_v20, %v2888_v55 }
 0x2c0   : > { %v2684_v36 = vpop.f32.mrf.mxu1  ;;  %1368 = vadd.xlane.f32.xlu1 %v1367_v23  ;;  %v1303_v56 = vmul.f32 %v2682_v30, %v2888_v55 }
 0x2c1   : > { %v1335_v62 = vmul.f32 %v2684_v36, %v2888_v55 }
 0x2c2   : > { %1304 = vadd.xlane.f32.xlu2 %v1303_v56 }
 0x2c3   : > { %1336 = vadd.xlane.f32.xlu0 %v1335_v62 }
 0x2c5   : > { %v1365_v63 = vpop.f32.mrf.mxu2 }
 0x2c6   : > { %v1397_v5 = vpop.f32.mrf.mxu3 }
 0x2c7   : > { %v1301_v21 = vpop.f32.mrf.mxu0 }
 0x2c8   : > { %v1333_v25 = vpop.f32.mrf.mxu1 }
 0x2ca   : > { %1400 = vadd.xlane.f32.xlu2 %v1399_v35 }
 0x2f5   : > { %v1241_v54 = vpop.xlane.xlu0 %1240 }
 0x2f6   : > { %v1243_v16 = vsel %vm1242_vm3, %v1241_v54, 0.0  ;;  %v1245_v32 = vmul.f32 %v1241_v54, %v2662_v48 }
 0x2f7   : > { %v1209_v7 = vpop.xlane.xlu2 %1208 }
 0x2f8   : > { %v1177_v26 = vpop.xlane.xlu1 %1176  ;;  %v1211_v37 = vsel %vm1210_vm1, %v1209_v7, 0.0  ;;  %v1213_v9 = vmul.f32 %v1209_v7, %v2666_v57 }
 0x2f9   : > { %v1179_v29 = vsel %vm1178_vm2, %v1177_v26, 0.0  ;;  %v1181_v22 = vmul.f32 %v1177_v26, %v2668_v58 }
 0x2fa   : > { %v1212_v47 = vadd.f32 %v1211_v37, %v1179_v29 }
 0x2fb   : > { %v1214_v28 = vadd.f32 %v1213_v9, %v1181_v22 }
 0x2fc   : > { %v1244_v43 = vadd.f32 %v1243_v16, %v1212_v47 }
 0x2fd   : > { %v1246_v41 = vadd.f32 %v1245_v32, %v1214_v28 }
 0x300   : > { %v1273_v17 = vpop.xlane.xlu1 %1272 }
 0x301   : > { %v1275_v10 = vsel %vm1274_vm4, %v1273_v17, 0.0  ;;  %v1277_v42 = vmul.f32 %v1273_v17, %v2660_v39 }
 0x302   : > { %v1276_v45 = vadd.f32 %v1275_v10, %v1244_v43 }
 0x303   : > { %v1278_v46 = vadd.f32 %v1277_v42, %v1246_v41 }
 0x333   : > { %v1369_v39 = vpop.xlane.xlu1 %1368 }
 0x334   : > { %v1371_v34 = vsel %vm1370_vm7, %v1369_v39, 0.0  ;;  %v1373_v44 = vmul.f32 %v1369_v39, %v2676_v6 }
 0x335   : > { %v1305_v49 = vpop.xlane.xlu2 %1304 }
 0x336   : > { %v1307_v38 = vsel %vm1306_vm5, %v1305_v49, 0.0  ;;  %v1309_v60 = vmul.f32 %v1305_v49, %v2682_v30  ;;  %v1337_v55 = vpop.xlane.xlu0 %1336 }
 0x337   : > { %v1308_v14 = vadd.f32 %v1307_v38, %v1276_v45  ;;  %v1339_v58 = vsel %vm1338_vm6, %v1337_v55, 0.0  ;;  %v1341_v48 = vmul.f32 %v1337_v55, %v2684_v36 }
 0x338   : > { %v1310_v57 = vadd.f32 %v1309_v60, %v1278_v46 }
 0x339   : > { %v1340_v27 = vadd.f32 %v1339_v58, %v1308_v14 }
 0x33a   : > { %v1342_v33 = vadd.f32 %v1341_v48, %v1310_v57 }
 0x33b   : > { %v1372_v1 = vadd.f32 %v1371_v34, %v1340_v27 }
 0x33c   : > { %v1374_v2 = vadd.f32 %v1373_v44, %v1342_v33 }
 0x33d   : > { %v1401_v59 = vpop.xlane.xlu2 %1400 }
 0x33e   : > { %v1403_v23 = vsel %vm1402_vm8, %v1401_v59, 0.0  ;;  %v1405_v30 = vmul.f32 %v1401_v59, %v2678_v20 }
 0x33f   : > { %v1404_v36 = vadd.f32 %v1403_v23, %v1372_v1 }
 0x340   : > { %v1406_v56 = vadd.f32 %v1405_v30, %v1374_v2 }
 0x341   : > { %1408 = vst.msk [vmem:[%s369_s12] sm:$0xff] %vm1407_vm9, %v1404_v36 }
 0x342   : > { %v1409_v62 = vpack.c.bf16 %v1406_v56, %v1406_v56 }
 0x344   : > { %1559 = vmatmul.bf16.vlgmr.msra.gmra.mxu1 %v1409_v62 }
 0x345   : > { %2014 = shalt.err (!%p2011_p7)
}
 0x346   : > { %1871 = dma.vmem_to_hbm [thread:$0]  (%p2185_p11), %s1612_s23, 128, %s1614_s19, %s1582_s24   ;;  %v1499_v6 = vpop.f32.mrf.mxu0  ;;  %v1922_v63 = vld [vmem:[%s2809_s5] ss:$0 sm:$0xff] }
 0x347   : > { %s1592_s22 = scalar_lea.hbm %s2810_s6, %s1846_s13  ;;  %s2889_s29 = sshll.u32 %s2221_s26, 3 }
 0x348   : > { %s355_s14 = scalar_lea.vmem [#allocation5], %s2889_s29  ;;  %s1596_s23 = sshll.u32 %s1592_s22, 4  ;;  %s1597_s23 = int_to_ptr.hbm [resolvable:$true] %s1596_s23 }
 0x349   : > { %s1594_s20 = sshll.u32 %s355_s14, 4  ;;  %s1572_s19 = scalar_lea.sflag [#allocation4], %s2221_s26  ;;  %s1595_s20 = int_to_ptr.vmem [resolvable:$true] %s1594_s20 }
 0x34a   : > { %s2029_s24 = sshra.s32 %s1597_s23, 4  ;;  %s2035_s25 = scalar_lea.hbm %s2810_s6, 16  ;;  %s2030_s24 = int_to_ptr.hbm [resolvable:$true] %s2029_s24 }
 0x34b   : > { %s2031_s16 = scalar_lea.hbm %s2030_s24, 8  ;;  %p2036_p2 = scmp.lt.s32.totalorder %s2030_s24, %s2810_s6 }
 0x34c   : > { %p2032_p5 = scmp.ne.s32.totalorder %s2030_s24, %s2031_s16  ;;  %p2037_p6 = scmp.lt.s32.totalorder %s2035_s25, %s2031_s16 }
 0x34e   : > { %v1501_v20 = vpop.f32.mrf.mxu0  ;;  %p2033_p8 = pnand %p2032_p5, %p2185_p11  ;;  %p2038_p9 = por %p2037_p6, %p2036_p2 }
 0x350   : > { %p2034_p10 = pneg %p2033_p8 }
 0x352   : > { %p2039_p13 = pnand %p2038_p9, %p2034_p10 }
 0x3c1   : > { %v1560_v5 = vpop.f32.mrf.mxu1 }
 0x3c2   : > { %v1561_v21 = vadd.f32 %v1560_v5, %v1499_v6 }
 0x3c4   : > { %v1568_v25 = vadd.f32 %v1922_v63, %v1561_v21 }
 0x3c6   : > { %1955 = vtanh.f32 %v1568_v25 }
 0x3c9   : > { %v1562_v35 = vpop.f32.mrf.mxu1 }
 0x3cc   : > { %v1956_v40 = vpop.eup %1955 }
 0x3cd   : > { %1570 = vst [vmem:[%s355_s14] sm:$0xff] %v1956_v40 }
 0x3ce   : > { %2042 = shalt.err (!%p2039_p13)
}
 0x3cf   : > { %1870 = dma.vmem_to_hbm [thread:$0]  (%p2185_p11), %s1595_s20, 128, %s1597_s23, %s1572_s19  }
 0x3d0 PF: > { %s1625_s26 = sand.u32 1, %s2073_s27   ;;  %p2890_p0 = scmp.ge.s32.totalorder %s2085_s30, 2 }
 0x3d1   : > { %s1626_s10 = scalar_lea.sflag [#allocation4], %s1625_s26 }
 0x3d2   : > { %p1879_p1 = pnand %p2890_p0, %p2189_p12 }
 0x3d4   : > { %p1880_p3 = pneg %p1879_p1 }
 0x3d6   : > { %2064 = dma.done.wait (%p1880_p3), %s1626_s10, 128  }
 0x3d7   : > { %2066 = vsyncadd (%p1880_p3), %s1626_s10, 4294967168  ;;  %s1644_s15 = scalar_lea.sflag [#allocation7], %s1625_s26 }
 0x3d8   : > { %2068 = dma.done.wait (%p1880_p3), %s1644_s15, 128  }
 0x3d9   : > { %2070 = vsyncadd (%p1880_p3), %s1644_s15, 4294967168  ;;  %s2891_s22 = sld [smem:[#allocation11_spill]]  ;;  %p25_p11 = scmp.ge.s32.totalorder %s2160_s11, 4  }
 0x3da   : > { %s2892_s29 = sld [smem:[#allocation12_spill]]  ;;  %s2893_s27 = smov %s2077_s28 }
 0x3db   : > { %s2895_s30 = smov %s2160_s11  ;;  %27 = sbr.rel (!%p25_p11) target bundleno = 7 (0x7), region = 124 }
 0x3df   : > { %s2894_s28 = smov %s2891_s22 }
 0x3e0   :  { %1650 = vsyncpa [#allocation3], 1 }
 0x3e1   :  { %1652 = vsyncpa [#allocation3 + $0x1], 1 }
 0x3e2   :  { %1653 = vsyncpa [#allocation4], 1 }
 0x3e3   :  { %1655 = vsyncpa [#allocation4 + $0x1], 1 }
 0x3e4   :  { %1656 = vsyncpa [#allocation7], 1 }
 0x3e5   :  { %1658 = vsyncpa [#allocation7 + $0x1], 1 }

</bundles_post_ra>
